<compile_context>
chip_gen: v7x
topology: tpu7x:2x2x1
jax: 0.10.0
libtpu: 0.0.40
codegen_flags: <defaults>
</compile_context>

<pallas_src>
import numpy as np
import jax
import jax.numpy as jnp
from jax import lax
from jax.experimental import pallas as pl
from jax.experimental.pallas import tpu as pltpu


# ----------------------------------------------------------------------------
# bf16_3x ("HIGH"-precision) matmul building blocks
# ----------------------------------------------------------------------------
def _bf16_split(x):
    hi = x.astype(jnp.bfloat16)
    lo = (x - hi.astype(jnp.float32)).astype(jnp.bfloat16)
    return hi, lo


def _dot3(a_hi, a_lo, b_hi, b_lo):
    # a @ b ~= a_hi@b_hi + a_lo@b_hi + a_hi@b_lo   (drops only a_lo@b_lo)
    d = lambda x, y: jnp.dot(x, y, preferred_element_type=jnp.float32)
    return d(a_hi, b_hi) + d(a_lo, b_hi) + d(a_hi, b_lo)


def _round_up(x, m):
    return ((x + m - 1) // m) * m


# ----------------------------------------------------------------------------
# Pass 1: windowed STFT (two half-frame matmuls) -> power -> mel, plus packed
#         per-tile sum / sum-of-squares partials for the normalization stats.
# ----------------------------------------------------------------------------
def make_mel_stats_kernel(num_frames, f_pad, tm):
    need_mask = (f_pad != num_frames)

    def kernel(ca_ref, cb_ref, tt_hi_ref, tt_lo_ref, tb_hi_ref, tb_lo_ref,
               fb_hi_ref, fb_lo_ref, mel_ref, stats_ref):
        # ca_ref/cb_ref : [tm, hop] f32    (chunk_i and chunk_{i+1})
        # tt_*/tb_*     : [hop, 2*Fp] bf16 hi/lo of [win*cos | -win*sin] halves
        # fb_*          : [Fp, Mp]   bf16 hi/lo of the mel filterbank
        # mel_ref       : [tm, Mp]   raw mel tile
        # stats_ref     : [8, Mp]    row 0 = sum, row 1 = sum of squares
        fp = fb_hi_ref.shape[0]

        ca_hi, ca_lo = _bf16_split(ca_ref[...])
        cb_hi, cb_lo = _bf16_split(cb_ref[...])
        stft = (_dot3(ca_hi, ca_lo, tt_hi_ref[...], tt_lo_ref[...])
                + _dot3(cb_hi, cb_lo, tb_hi_ref[...], tb_lo_ref[...]))
        re = stft[:, :fp]
        im = stft[:, fp:]
        power = re * re + im * im                                  # f32 on VPU

        p_hi, p_lo = _bf16_split(power)
        mel = _dot3(p_hi, p_lo, fb_hi_ref[...], fb_lo_ref[...])    # [tm, Mp]
        mel_ref[...] = mel

        if need_mask:
            # padding frames beyond num_frames must not pollute the statistics
            row = (pl.program_id(0) * tm
                   + lax.broadcasted_iota(jnp.int32, (tm, 1), 0))
            mel = jnp.where(row < num_frames, mel, 0.0)
        stats_ref[0:1, :] = jnp.sum(mel, axis=0, keepdims=True)
        stats_ref[1:2, :] = jnp.sum(mel * mel, axis=0, keepdims=True)

    return kernel


# ----------------------------------------------------------------------------
# Pass 2: out = (mel - mean) * inv_std   (lane-dense 128-wide tiles)
# ----------------------------------------------------------------------------
def normalize_kernel(mel_ref, mean_ref, inv_ref, out_ref):
    out_ref[...] = (mel_ref[...] - mean_ref[...]) * inv_ref[...]


# ----------------------------------------------------------------------------
# Host-side deterministic "parameters" (mirror torchaudio defaults)
# ----------------------------------------------------------------------------
def hann_window_periodic(n_fft):
    n = np.arange(n_fft, dtype=np.float64)
    return (0.5 * (1.0 - np.cos(2.0 * np.pi * n / n_fft))).astype(np.float32)


def mel_filterbank(sample_rate, n_fft, n_mels):
    # torchaudio.functional.melscale_fbanks(norm=None, mel_scale="htk")
    n_stft = n_fft // 2 + 1
    all_freqs = np.linspace(0.0, sample_rate / 2.0, n_stft)
    f_min, f_max = 0.0, sample_rate / 2.0
    m_min = 2595.0 * np.log10(1.0 + f_min / 700.0)
    m_max = 2595.0 * np.log10(1.0 + f_max / 700.0)
    m_pts = np.linspace(m_min, m_max, n_mels + 2)
    f_pts = 700.0 * (10.0 ** (m_pts / 2595.0) - 1.0)
    f_diff = f_pts[1:] - f_pts[:-1]
    slopes = f_pts[None, :] - all_freqs[:, None]                  # [n_stft, n_mels+2]
    down = -slopes[:, :-2] / f_diff[:-1]
    up = slopes[:, 2:] / f_diff[1:]
    return np.maximum(0.0, np.minimum(down, up)).astype(np.float32)


def dft_matrices(n_fft):
    # rfft as matmul: X[k] = sum_n x[n] * exp(-2*pi*i*k*n / n_fft)
    n_stft = n_fft // 2 + 1
    n = np.arange(n_fft, dtype=np.float64)[:, None]
    k = np.arange(n_stft, dtype=np.float64)[None, :]
    ang = 2.0 * np.pi * n * k / n_fft
    return np.cos(ang).astype(np.float32), (-np.sin(ang)).astype(np.float32)


def _split_bf16(x_np):
    x = jnp.asarray(x_np, jnp.float32)
    hi = x.astype(jnp.bfloat16)
    lo = (x - hi.astype(jnp.float32)).astype(jnp.bfloat16)
    return hi, lo


# ----------------------------------------------------------------------------
# Wrapper (shapes are static -> safe to wrap in jax.jit; aliasing in pass 2
# only saves HBM when the whole transform is jitted).
# ----------------------------------------------------------------------------
def mel_spec_transform_old(waveform, sample_rate, n_fft=400, n_mels=64,
                           frame_tile=512, norm_tile=2048):
    """Forward pass of MelSpecTransformOld. Returns (frames, n_mels) f32."""
    waveform = jnp.asarray(waveform, jnp.float32).reshape(-1)     # .squeeze()
    T = waveform.shape[0]
    hop = n_fft // 2
    n_stft = n_fft // 2 + 1
    fp = _round_up(n_stft, 128)        # lane-padded frequency axis
    mp = _round_up(n_mels, 128)        # lane-padded mel axis (dense stores)

    num_frames = 1 + T // hop
    tm = frame_tile if num_frames >= frame_tile else max(8, _round_up(num_frames, 8))
    f_pad = _round_up(num_frames, tm)
    n_tiles = f_pad // tm

    # --- framing without gather: non-overlapping hop-sized chunks --------------
    # frame i = concat(chunk_i, chunk_{i+1}),  chunk_j = padded[j*hop:(j+1)*hop]
    padded = jnp.pad(waveform, (hop, hop), mode="reflect")
    n_chunks = max(f_pad + 1, pl.cdiv(T + 2 * hop, hop))
    padded = jnp.pad(padded, (0, n_chunks * hop - (T + 2 * hop)))
    chunks = padded.reshape(n_chunks, hop)
    chunks_a = chunks[:f_pad]                                     # chunk_i
    chunks_b = chunks[1:f_pad + 1]                                # chunk_{i+1}

    # --- deterministic "parameters": window folded into DFT, cos|sin fused ----
    win = hann_window_periodic(n_fft)                              # [n_fft]
    cos_m, sin_m = dft_matrices(n_fft)                             # [n_fft, n_stft]
    trig = np.zeros((n_fft, 2 * fp), np.float32)
    trig[:, :n_stft] = cos_m * win[:, None]
    trig[:, fp:fp + n_stft] = sin_m * win[:, None]
    tt_hi, tt_lo = _split_bf16(trig[:hop])                         # top half
    tb_hi, tb_lo = _split_bf16(trig[hop:])                         # bottom half

    fb = mel_filterbank(sample_rate, n_fft, n_mels)                # [n_stft, n_mels]
    fb_p = np.zeros((fp, mp), np.float32)
    fb_p[:n_stft, :n_mels] = fb
    fb_hi, fb_lo = _split_bf16(fb_p)

    cparams = pltpu.CompilerParams(
        dimension_semantics=("parallel",),       # both TCs on v7x
        vmem_limit_bytes=32 * 1024 * 1024)

    cost = pl.CostEstimate(
        flops=int(3 * 2 * f_pad * n_fft * 2 * fp          # bf16_3x STFT matmuls
                  + 3 * f_pad * fp                        # power
                  + 3 * 2 * f_pad * fp * mp),             # bf16_3x mel projection
        transcendentals=0,
        bytes_accessed=int(4 * 2 * f_pad * hop
                           + 2 * (4 * hop * 2 * fp + 2 * fp * mp)
                           + 4 * f_pad * mp
                           + 4 * 8 * n_tiles * mp))

    # ---------------------------- pass 1 --------------------------------------
    mel, stats = pl.pallas_call(
        make_mel_stats_kernel(num_frames, f_pad, tm),
        out_shape=(jax.ShapeDtypeStruct((f_pad, mp), jnp.float32),
                   jax.ShapeDtypeStruct((8 * n_tiles, mp), jnp.float32)),
        grid_spec=pltpu.PrefetchScalarGridSpec(
            num_scalar_prefetch=0,
            grid=(n_tiles,),
            in_specs=[pl.BlockSpec((tm, hop), lambda i: (i, 0)),
                      pl.BlockSpec((tm, hop), lambda i: (i, 0)),
                      pl.BlockSpec((hop, 2 * fp), lambda i: (0, 0)),
                      pl.BlockSpec((hop, 2 * fp), lambda i: (0, 0)),
                      pl.BlockSpec((hop, 2 * fp), lambda i: (0, 0)),
                      pl.BlockSpec((hop, 2 * fp), lambda i: (0, 0)),
                      pl.BlockSpec((fp, mp), lambda i: (0, 0)),
                      pl.BlockSpec((fp, mp), lambda i: (0, 0))],
            out_specs=(pl.BlockSpec((tm, mp), lambda i: (i, 0)),
                       pl.BlockSpec((8, mp), lambda i: (i, 0)))),
        compiler_params=cparams,
        cost_estimate=cost,
    )(chunks_a, chunks_b, tt_hi, tt_lo, tb_hi, tb_lo, fb_hi, fb_lo)

    # --- tiny stats finalization (n_mels scalars; exact division here only) ----
    total = stats[0::8, :].sum(axis=0)
    total_sq = stats[1::8, :].sum(axis=0)
    mean = total / num_frames
    var = jnp.maximum(total_sq / num_frames - mean * mean, 0.0)   # unbiased=False
    inv = 1.0 / (jnp.sqrt(var) + 1e-9)
    mean2 = mean[None, :].astype(jnp.float32)                     # [1, Mp]
    inv2 = inv[None, :].astype(jnp.float32)                       # [1, Mp]

    # ---------------------------- pass 2 --------------------------------------
    # mem-bound elementwise: use the largest row block that divides f_pad
    tm2 = tm
    while tm2 * 2 <= min(f_pad, norm_tile) and f_pad % (tm2 * 2) == 0:
        tm2 *= 2
    n_tiles2 = f_pad // tm2

    out = pl.pallas_call(
        normalize_kernel,
        out_shape=jax.ShapeDtypeStruct((f_pad, mp), jnp.float32),
        grid_spec=pltpu.PrefetchScalarGridSpec(
            num_scalar_prefetch=0,
            grid=(n_tiles2,),
            in_specs=[pl.BlockSpec((tm2, mp), lambda i: (i, 0)),
                      pl.BlockSpec((1, mp), lambda i: (0, 0)),
                      pl.BlockSpec((1, mp), lambda i: (0, 0))],
            out_specs=pl.BlockSpec((tm2, mp), lambda i: (i, 0))),
        compiler_params=cparams,
        input_output_aliases={0: 0},      # reuse mel's HBM buffer (under jit)
    )(mel, mean2, inv2)

    return out[:num_frames, :n_mels]


# ----------------------------------------------------------------------------
# Pure-numpy float64 reference for the correctness check.
# ----------------------------------------------------------------------------
def reference(waveform, sample_rate, n_fft, n_mels):
    w = np.asarray(waveform, np.float64).reshape(-1)
    hop = n_fft // 2
    padded = np.pad(w, (hop, hop), mode="reflect")
    num_frames = 1 + w.shape[0] // hop
    idx = np.arange(num_frames)[:, None] * hop + np.arange(n_fft)[None, :]
    frames = padded[idx] * hann_window_periodic(n_fft).astype(np.float64)
    spec = np.fft.rfft(frames, n=n_fft, axis=-1)
    power = np.abs(spec) ** 2                                     # [F, n_stft]
    mel = power @ mel_filterbank(sample_rate, n_fft, n_mels).astype(np.float64)
    mean = mel.mean(axis=0, keepdims=True)
    std = mel.std(axis=0, keepdims=True)                          # unbiased=False
    return (mel - mean) / (std + 1e-9)


if __name__ == "__main__":
    # Small shapes consistent with the module defaults: one mono waveform.
    sample_rate = 16000
    n_fft = 400            # module default
    n_mels = 64            # module default
    hop = n_fft // 2
    T = 15 * hop           # -> 16 STFT frames

    key = jax.random.PRNGKey(0)
    waveform = jax.random.normal(key, (T,), dtype=jnp.float32)

    fn = jax.jit(lambda w: mel_spec_transform_old(
        w, sample_rate, n_fft=n_fft, n_mels=n_mels))
    out = fn(waveform)
    out = jax.block_until_ready(out)

    ref = reference(np.asarray(waveform), sample_rate, n_fft, n_mels)
    assert out.shape == ref.shape == (1 + T // hop, n_mels)
    np.testing.assert_allclose(np.asarray(out), ref, rtol=5e-3, atol=5e-3)

    print("KERNEL_OK")
</pallas_src>

<mosaic_0001>
module attributes {stable_mosaic.version = 11 : i64} {
  func.func @normalize_kernel(%arg0: i32, %arg1: memref<16x128xf32, #tpu.memory_space<vmem>>, %arg2: memref<1x128xf32, #tpu.memory_space<vmem>>, %arg3: memref<1x128xf32, #tpu.memory_space<vmem>>, %arg4: memref<16x128xf32, #tpu.memory_space<vmem>>) attributes {dimension_semantics = [#tpu.dimension_semantics<parallel>], iteration_bounds = array<i64: 1>, scalar_prefetch = 0 : i64, scratch_operands = 0 : i64, tpu.core_type = #tpu.core_type<tc>, window_params = [{transform_indices = @transform_0, window_bounds = array<i64: 16, 128>}, {pipeline_mode = #tpu.pipeline_mode<synchronous>, transform_indices = @transform_1, window_bounds = array<i64: 1, 128>}, {pipeline_mode = #tpu.pipeline_mode<synchronous>, transform_indices = @transform_2, window_bounds = array<i64: 1, 128>}, {transform_indices = @transform_3, window_bounds = array<i64: 16, 128>}]} {
    %c0 = arith.constant 0 : index
    %c0_0 = arith.constant 0 : index
    %0 = vector.load %arg1[%c0, %c0_0] : memref<16x128xf32, #tpu.memory_space<vmem>>, vector<16x128xf32>
    %c0_1 = arith.constant 0 : index
    %c0_2 = arith.constant 0 : index
    %1 = vector.load %arg2[%c0_1, %c0_2] : memref<1x128xf32, #tpu.memory_space<vmem>>, vector<1x128xf32>
    %2 = vector.broadcast %1 : vector<1x128xf32> to vector<16x128xf32>
    %3 = arith.subf %0, %2 : vector<16x128xf32>
    %c0_3 = arith.constant 0 : index
    %c0_4 = arith.constant 0 : index
    %4 = vector.load %arg3[%c0_3, %c0_4] : memref<1x128xf32, #tpu.memory_space<vmem>>, vector<1x128xf32>
    %5 = vector.broadcast %4 : vector<1x128xf32> to vector<16x128xf32>
    %6 = arith.mulf %3, %5 : vector<16x128xf32>
    %c0_5 = arith.constant 0 : index
    %c0_6 = arith.constant 0 : index
    %7 = vector.load %arg4[%c0_5, %c0_6] : memref<16x128xf32, #tpu.memory_space<vmem>>, vector<16x128xf32>
    tpu.vector_store %arg4[%c0_5, %c0_6], %6 {strides = array<i32>} : memref<16x128xf32, #tpu.memory_space<vmem>>, vector<16x128xf32>,
    return
  }
  func.func @transform_0(%arg0: i32) -> (i32, i32) {
    %c0_i32 = arith.constant 0 : i32
    %c0_i32_0 = arith.constant 0 : i32
    return %arg0, %c0_i32 : i32, i32
  }
  func.func @transform_1(%arg0: i32) -> (i32, i32) {
    %c0_i32 = arith.constant 0 : i32
    %c0_i32_0 = arith.constant 0 : i32
    %c0_i32_1 = arith.constant 0 : i32
    return %c0_i32, %c0_i32_0 : i32, i32
  }
  func.func @transform_2(%arg0: i32) -> (i32, i32) {
    %c0_i32 = arith.constant 0 : i32
    %c0_i32_0 = arith.constant 0 : i32
    %c0_i32_1 = arith.constant 0 : i32
    return %c0_i32, %c0_i32_0 : i32, i32
  }
  func.func @transform_3(%arg0: i32) -> (i32, i32) {
    %c0_i32 = arith.constant 0 : i32
    %c0_i32_0 = arith.constant 0 : i32
    return %arg0, %c0_i32 : i32, i32
  }
}

module attributes {stable_mosaic.version = 11 : i64} {
  func.func @kernel(%arg0: i32, %arg1: memref<16x200xf32, #tpu.memory_space<vmem>>, %arg2: memref<16x200xf32, #tpu.memory_space<vmem>>, %arg3: memref<200x512xbf16, #tpu.memory_space<vmem>>, %arg4: memref<200x512xbf16, #tpu.memory_space<vmem>>, %arg5: memref<200x512xbf16, #tpu.memory_space<vmem>>, %arg6: memref<200x512xbf16, #tpu.memory_space<vmem>>, %arg7: memref<256x128xbf16, #tpu.memory_space<vmem>>, %arg8: memref<256x128xbf16, #tpu.memory_space<vmem>>, %arg9: memref<16x128xf32, #tpu.memory_space<vmem>>, %arg10: memref<8x128xf32, #tpu.memory_space<vmem>>) attributes {dimension_semantics = [#tpu.dimension_semantics<parallel>], iteration_bounds = array<i64: 1>, scalar_prefetch = 0 : i64, scratch_operands = 0 : i64, tpu.core_type = #tpu.core_type<tc>, window_params = [{transform_indices = @transform_0, window_bounds = array<i64: 16, 200>}, {transform_indices = @transform_1, window_bounds = array<i64: 16, 200>}, {pipeline_mode = #tpu.pipeline_mode<synchronous>, transform_indices = @transform_2, window_bounds = array<i64: 200, 512>}, {pipeline_mode = #tpu.pipeline_mode<synchronous>, transform_indices = @transform_3, window_bounds = array<i64: 200, 512>}, {pipeline_mode = #tpu.pipeline_mode<synchronous>, transform_indices = @transform_4, window_bounds = array<i64: 200, 512>}, {pipeline_mode = #tpu.pipeline_mode<synchronous>, transform_indices = @transform_5, window_bounds = array<i64: 200, 512>}, {pipeline_mode = #tpu.pipeline_mode<synchronous>, transform_indices = @transform_6, window_bounds = array<i64: 256, 128>}, {pipeline_mode = #tpu.pipeline_mode<synchronous>, transform_indices = @transform_7, window_bounds = array<i64: 256, 128>}, {transform_indices = @transform_8, window_bounds = array<i64: 16, 128>}, {transform_indices = @transform_9, window_bounds = array<i64: 8, 128>}]} {
    %c0 = arith.constant 0 : index
    %c0_0 = arith.constant 0 : index
    %0 = vector.load %arg1[%c0, %c0_0] : memref<16x200xf32, #tpu.memory_space<vmem>>, vector<16x200xf32>
    %1 = arith.truncf %0 : vector<16x200xf32> to vector<16x200xbf16>
    %2 = arith.extf %1 : vector<16x200xbf16> to vector<16x200xf32>
    %3 = arith.subf %0, %2 : vector<16x200xf32>
    %4 = arith.truncf %3 : vector<16x200xf32> to vector<16x200xbf16>
    %c0_1 = arith.constant 0 : index
    %c0_2 = arith.constant 0 : index
    %5 = vector.load %arg2[%c0_1, %c0_2] : memref<16x200xf32, #tpu.memory_space<vmem>>, vector<16x200xf32>
    %6 = arith.truncf %5 : vector<16x200xf32> to vector<16x200xbf16>
    %7 = arith.extf %6 : vector<16x200xbf16> to vector<16x200xf32>
    %8 = arith.subf %5, %7 : vector<16x200xf32>
    %9 = arith.truncf %8 : vector<16x200xf32> to vector<16x200xbf16>
    %c0_3 = arith.constant 0 : index
    %c0_4 = arith.constant 0 : index
    %10 = vector.load %arg3[%c0_3, %c0_4] : memref<200x512xbf16, #tpu.memory_space<vmem>>, vector<200x512xbf16>
    %c0_5 = arith.constant 0 : index
    %c0_6 = arith.constant 0 : index
    %11 = vector.load %arg4[%c0_5, %c0_6] : memref<200x512xbf16, #tpu.memory_space<vmem>>, vector<200x512xbf16>
    %cst = arith.constant dense<0.000000e+00> : vector<16x512xf32>
    %12 = tpu.matmul %1, %10, %cst {dimension_numbers = #tpu.dot_dimension_numbers<[1], [0], [0], [1], [0, 0, 1, 1], [], []>} : vector<16x200xbf16>, vector<200x512xbf16>, vector<16x512xf32> -> vector<16x512xf32>
    %cst_7 = arith.constant dense<0.000000e+00> : vector<16x512xf32>
    %13 = tpu.matmul %4, %10, %cst_7 {dimension_numbers = #tpu.dot_dimension_numbers<[1], [0], [0], [1], [0, 0, 1, 1], [], []>} : vector<16x200xbf16>, vector<200x512xbf16>, vector<16x512xf32> -> vector<16x512xf32>
    %14 = arith.addf %12, %13 : vector<16x512xf32>
    %cst_8 = arith.constant dense<0.000000e+00> : vector<16x512xf32>
    %15 = tpu.matmul %1, %11, %cst_8 {dimension_numbers = #tpu.dot_dimension_numbers<[1], [0], [0], [1], [0, 0, 1, 1], [], []>} : vector<16x200xbf16>, vector<200x512xbf16>, vector<16x512xf32> -> vector<16x512xf32>
    %16 = arith.addf %14, %15 : vector<16x512xf32>
    %c0_9 = arith.constant 0 : index
    %c0_10 = arith.constant 0 : index
    %17 = vector.load %arg5[%c0_9, %c0_10] : memref<200x512xbf16, #tpu.memory_space<vmem>>, vector<200x512xbf16>
    %c0_11 = arith.constant 0 : index
    %c0_12 = arith.constant 0 : index
    %18 = vector.load %arg6[%c0_11, %c0_12] : memref<200x512xbf16, #tpu.memory_space<vmem>>, vector<200x512xbf16>
    %cst_13 = arith.constant dense<0.000000e+00> : vector<16x512xf32>
    %19 = tpu.matmul %6, %17, %cst_13 {dimension_numbers = #tpu.dot_dimension_numbers<[1], [0], [0], [1], [0, 0, 1, 1], [], []>} : vector<16x200xbf16>, vector<200x512xbf16>, vector<16x512xf32> -> vector<16x512xf32>
    %cst_14 = arith.constant dense<0.000000e+00> : vector<16x512xf32>
    %20 = tpu.matmul %9, %17, %cst_14 {dimension_numbers = #tpu.dot_dimension_numbers<[1], [0], [0], [1], [0, 0, 1, 1], [], []>} : vector<16x200xbf16>, vector<200x512xbf16>, vector<16x512xf32> -> vector<16x512xf32>
    %21 = arith.addf %19, %20 : vector<16x512xf32>
    %cst_15 = arith.constant dense<0.000000e+00> : vector<16x512xf32>
    %22 = tpu.matmul %6, %18, %cst_15 {dimension_numbers = #tpu.dot_dimension_numbers<[1], [0], [0], [1], [0, 0, 1, 1], [], []>} : vector<16x200xbf16>, vector<200x512xbf16>, vector<16x512xf32> -> vector<16x512xf32>
    %23 = arith.addf %21, %22 : vector<16x512xf32>
    %24 = arith.addf %16, %23 : vector<16x512xf32>
    %25 = vector.extract_strided_slice %24 {offsets = [0, 0], sizes = [16, 256], strides = [1, 1]} : vector<16x512xf32> to vector<16x256xf32>
    %26 = vector.extract_strided_slice %24 {offsets = [0, 256], sizes = [16, 256], strides = [1, 1]} : vector<16x512xf32> to vector<16x256xf32>
    %27 = arith.mulf %25, %25 : vector<16x256xf32>
    %28 = arith.mulf %26, %26 : vector<16x256xf32>
    %29 = arith.addf %27, %28 : vector<16x256xf32>
    %30 = arith.truncf %29 : vector<16x256xf32> to vector<16x256xbf16>
    %31 = arith.extf %30 : vector<16x256xbf16> to vector<16x256xf32>
    %32 = arith.subf %29, %31 : vector<16x256xf32>
    %33 = arith.truncf %32 : vector<16x256xf32> to vector<16x256xbf16>
    %c0_16 = arith.constant 0 : index
    %c0_17 = arith.constant 0 : index
    %34 = vector.load %arg7[%c0_16, %c0_17] : memref<256x128xbf16, #tpu.memory_space<vmem>>, vector<256x128xbf16>
    %c0_18 = arith.constant 0 : index
    %c0_19 = arith.constant 0 : index
    %35 = vector.load %arg8[%c0_18, %c0_19] : memref<256x128xbf16, #tpu.memory_space<vmem>>, vector<256x128xbf16>
    %cst_20 = arith.constant dense<0.000000e+00> : vector<16x128xf32>
    %36 = tpu.matmul %30, %34, %cst_20 {dimension_numbers = #tpu.dot_dimension_numbers<[1], [0], [0], [1], [0, 0, 1, 1], [], []>} : vector<16x256xbf16>, vector<256x128xbf16>, vector<16x128xf32> -> vector<16x128xf32>
    %cst_21 = arith.constant dense<0.000000e+00> : vector<16x128xf32>
    %37 = tpu.matmul %33, %34, %cst_21 {dimension_numbers = #tpu.dot_dimension_numbers<[1], [0], [0], [1], [0, 0, 1, 1], [], []>} : vector<16x256xbf16>, vector<256x128xbf16>, vector<16x128xf32> -> vector<16x128xf32>
    %38 = arith.addf %36, %37 : vector<16x128xf32>
    %cst_22 = arith.constant dense<0.000000e+00> : vector<16x128xf32>
    %39 = tpu.matmul %30, %35, %cst_22 {dimension_numbers = #tpu.dot_dimension_numbers<[1], [0], [0], [1], [0, 0, 1, 1], [], []>} : vector<16x256xbf16>, vector<256x128xbf16>, vector<16x128xf32> -> vector<16x128xf32>
    %40 = arith.addf %38, %39 : vector<16x128xf32>
    %c0_23 = arith.constant 0 : index
    %c0_24 = arith.constant 0 : index
    %41 = vector.load %arg9[%c0_23, %c0_24] : memref<16x128xf32, #tpu.memory_space<vmem>>, vector<16x128xf32>
    tpu.vector_store %arg9[%c0_23, %c0_24], %40 {strides = array<i32>} : memref<16x128xf32, #tpu.memory_space<vmem>>, vector<16x128xf32>,
    %cst_25 = arith.constant dense<0.000000e+00> : vector<128xf32>
    %42 = vector.multi_reduction <add>, %40, %cst_25 [0] : vector<16x128xf32> to vector<128xf32>
    %43 = vector.shape_cast %42 : vector<128xf32> to vector<1x128xf32>
    %c0_26 = arith.constant 0 : index
    %c0_27 = arith.constant 0 : index
    %44 = vector.load %arg10[%c0_26, %c0_27] : memref<8x128xf32, #tpu.memory_space<vmem>>, vector<1x128xf32>
    tpu.vector_store %arg10[%c0_26, %c0_27], %43 {strides = array<i32>} : memref<8x128xf32, #tpu.memory_space<vmem>>, vector<1x128xf32>,
    %45 = arith.mulf %40, %40 : vector<16x128xf32>
    %cst_28 = arith.constant dense<0.000000e+00> : vector<128xf32>
    %46 = vector.multi_reduction <add>, %45, %cst_28 [0] : vector<16x128xf32> to vector<128xf32>
    %47 = vector.shape_cast %46 : vector<128xf32> to vector<1x128xf32>
    %c1 = arith.constant 1 : index
    %c0_29 = arith.constant 0 : index
    %48 = vector.load %arg10[%c1, %c0_29] : memref<8x128xf32, #tpu.memory_space<vmem>>, vector<1x128xf32>
    tpu.vector_store %arg10[%c1, %c0_29], %47 {strides = array<i32>} : memref<8x128xf32, #tpu.memory_space<vmem>>, vector<1x128xf32>,
    return
  }
  func.func @transform_0(%arg0: i32) -> (i32, i32) {
    %c0_i32 = arith.constant 0 : i32
    %c0_i32_0 = arith.constant 0 : i32
    return %arg0, %c0_i32 : i32, i32
  }
  func.func @transform_1(%arg0: i32) -> (i32, i32) {
    %c0_i32 = arith.constant 0 : i32
    %c0_i32_0 = arith.constant 0 : i32
    return %arg0, %c0_i32 : i32, i32
  }
  func.func @transform_2(%arg0: i32) -> (i32, i32) {
    %c0_i32 = arith.constant 0 : i32
    %c0_i32_0 = arith.constant 0 : i32
    %c0_i32_1 = arith.constant 0 : i32
    return %c0_i32, %c0_i32_0 : i32, i32
  }
  func.func @transform_3(%arg0: i32) -> (i32, i32) {
    %c0_i32 = arith.constant 0 : i32
    %c0_i32_0 = arith.constant 0 : i32
    %c0_i32_1 = arith.constant 0 : i32
    return %c0_i32, %c0_i32_0 : i32, i32
  }
  func.func @transform_4(%arg0: i32) -> (i32, i32) {
    %c0_i32 = arith.constant 0 : i32
    %c0_i32_0 = arith.constant 0 : i32
    %c0_i32_1 = arith.constant 0 : i32
    return %c0_i32, %c0_i32_0 : i32, i32
  }
  func.func @transform_5(%arg0: i32) -> (i32, i32) {
    %c0_i32 = arith.constant 0 : i32
    %c0_i32_0 = arith.constant 0 : i32
    %c0_i32_1 = arith.constant 0 : i32
    return %c0_i32, %c0_i32_0 : i32, i32
  }
  func.func @transform_6(%arg0: i32) -> (i32, i32) {
    %c0_i32 = arith.constant 0 : i32
    %c0_i32_0 = arith.constant 0 : i32
    %c0_i32_1 = arith.constant 0 : i32
    return %c0_i32, %c0_i32_0 : i32, i32
  }
  func.func @transform_7(%arg0: i32) -> (i32, i32) {
    %c0_i32 = arith.constant 0 : i32
    %c0_i32_0 = arith.constant 0 : i32
    %c0_i32_1 = arith.constant 0 : i32
    return %c0_i32, %c0_i32_0 : i32, i32
  }
  func.func @transform_8(%arg0: i32) -> (i32, i32) {
    %c0_i32 = arith.constant 0 : i32
    %c0_i32_0 = arith.constant 0 : i32
    return %arg0, %c0_i32 : i32, i32
  }
  func.func @transform_9(%arg0: i32) -> (i32, i32) {
    %c0_i32 = arith.constant 0 : i32
    %c0_i32_0 = arith.constant 0 : i32
    return %arg0, %c0_i32 : i32, i32
  }
}

</mosaic_0001>

<bundles_post_ra>
// kernel: reverse.1
= control target key start
LH: loop header
LB: loop body
LE: loop exit
PB: predicated region body
PF: predicated region fallthrough
CT: control target
= control target key end

     0   :  { %v2_v0 = vlaneseq  ;;  %s123_s0 = inlined_call_operand.vmem [shape: f32[256], index: 0, kind: input, shape index: {}]   ;;  %s124_s1 = inlined_call_operand.vmem [shape: f32[256], index: 1, kind: output, shape index: {}]  }
   0x2   :  { %v3_v1 = vsub.s32 127, %v2_v0 }
   0x4   :  { %4 = vset.pattern.permute.xlu0 %v3_v1 }
   0x5   :  { %v43_v2 = vld [vmem:[#allocation1] sm:$0x3]  ;;  %v21_v3 = vld [vmem:[%s123_s0] sm:$0x3]  ;;  %v58_v10 = vshrl.u32 %v2_v0, 7 }
   0x6   :  { %44 = vst [vmem:[#allocation0] sm:$0x3] %v43_v2  ;;  %22 = vst [vmem:[#allocation1 + $0x2] sm:$0x3] %v21_v3 }
   0x7   :  { %vm59_vm0 = vcmp.lt.s32.totalorder %v58_v10, 2 }
   0xd   :  { %v46_v4 = vld [vmem:[#allocation0 + $0x7] ss:$-1 sm:$0xff]  ;;  %v40_v5 = vld [vmem:[#allocation1 + $0x2] sm:$0x3] }
   0xe   :  { %v47_v6 = vrot.slane %v46_v4, 6  ;;  %42 = vst [vmem:[#allocation0 + $0x8] sm:$0x3] %v40_v5 }
  0x10   :  { %48 = vperm.xlu0 %4, %v47_v6  }
  0x15   :  { %v53_v7 = vld [vmem:[#allocation0 + $0xf] ss:$-1 sm:$0xff] }
  0x16   :  { %v54_v8 = vrot.slane %v53_v7, 6 }
  0x18   :  { %55 = vperm.xlu0 %4, %v54_v8  }
  0x8f   :  { %v49_v9 = vpop.permute.xlu0 %48 }
  0x90   :  { %50 = vst [vmem:[#allocation2] sm:$0xff] %v49_v9 }
  0x97   :  { %v56_v11 = vpop.permute.xlu0 %55 }
  0x98   :  { %60 = vst.msk [vmem:[#allocation2] sm:$0xff] %vm59_vm0, %v56_v11 }
  0x9f   :  { %v64_v12 = vld [vmem:[#allocation2] sm:$0x3] }
  0xa0   :  { %66 = vst [vmem:[#allocation3] sm:$0x3] %v64_v12 }
  0xa7   :  { %v82_v13 = vld [vmem:[#allocation3] sm:$0x3] }
  0xa8   :  { %83 = vst [vmem:[%s124_s1] sm:$0x3] %v82_v13 }

// kernel: _lambda_.3
= control target key start
LH: loop header
LB: loop body
LE: loop exit
PB: predicated region body
PF: predicated region fallthrough
CT: control target
= control target key end

     0   :  { %s80_s0 = inlined_call_operand.vmem [shape: f32[16,128], index: 0, kind: input, shape index: {}, may-alias: {0,3}]   ;;  %s81_s1 = inlined_call_operand.vmem [shape: f32[1,128], index: 1, kind: input, shape index: {}]   ;;  %s82_s2 = inlined_call_operand.vmem [shape: f32[1,128], index: 2, kind: input, shape index: {}]   ;;  %s83_s3 = inlined_call_operand.vmem [shape: f32[16,128], index: 3, kind: output, shape index: {}, may-alias: {0,3}]  }
   0x1   :  { %v14_v0 = vld [vmem:[%s80_s0] sm:$0xff]  ;;  %v15_v4 = vld [vmem:[%s80_s0 + $0x8] sm:$0xff] }
   0x2   :  { %v40_v1 = vld [vmem:[%s81_s1] ss:$0 sm:$0xff] }
   0x3   :  { %v41_v2 = vld [vmem:[%s82_s2] ss:$0 sm:$0xff]  ;;  %v23_v3 = vsub.f32 %v14_v0, %v40_v1  ;;  %v24_v5 = vsub.f32 %v15_v4, %v40_v1 }
   0x5   :  { %v32_v6 = vmul.f32 %v41_v2, %v23_v3  ;;  %v33_v7 = vmul.f32 %v41_v2, %v24_v5 }
   0x7   :  { %34 = vst [vmem:[%s83_s3] sm:$0xff] %v32_v6  ;;  %35 = vst [vmem:[%s83_s3 + $0x8] sm:$0xff] %v33_v7 }

// kernel: _lambda_.2
= control target key start
LH: loop header
LB: loop body
LE: loop exit
PB: predicated region body
PF: predicated region fallthrough
CT: control target
= control target key end

     0   :  { %15 = vsyncpa [#allocation3], 0  ;;  %s3897_s0 = inlined_call_operand.vmem [shape: f32[16,200], index: 0, kind: input, shape index: {}]   ;;  %s3898_s1 = inlined_call_operand.vmem [shape: f32[16,200], index: 1, kind: input, shape index: {}]   ;;  %s3899_s2 = inlined_call_operand.hbm [shape: bf16[200,512], index: 2, kind: input, shape index: {}]   ;;  %s3900_s3 = inlined_call_operand.hbm [shape: bf16[200,512], index: 3, kind: input, shape index: {}]   ;;  %s3901_s4 = inlined_call_operand.hbm [shape: bf16[200,512], index: 4, kind: input, shape index: {}]   ;;  %s3902_s5 = inlined_call_operand.hbm [shape: bf16[200,512], index: 5, kind: input, shape index: {}]   ;;  %s3903_s6 = inlined_call_operand.vmem [shape: bf16[256,128], index: 6, kind: input, shape index: {}]   ;;  %s3904_s7 = inlined_call_operand.vmem [shape: bf16[256,128], index: 7, kind: input, shape index: {}]   ;;  %s3905_s8 = inlined_call_operand.vmem [shape: f32[16,128], index: 8, kind: output, shape index: {0}]   ;;  %s3906_s9 = inlined_call_operand.vmem [shape: f32[8,128], index: 9, kind: output, shape index: {1}]  }
   0x1   :  { %16 = vsyncpa [#allocation5], 0 }
   0x2   :  { %17 = vsyncpa [#allocation8], 0  ;;  %s3163_s30 = smov [#allocation4]   ;;  %s3164_s11 = smov [#allocation2]  }
   0x3   :  { %s39_s10 = sshll.u32 %s3163_s30, 4  ;;  %s27_s12 = sshll.u32 %s3164_s11, 4  ;;  %s40_s10 = int_to_ptr.vmem [resolvable:$true] %s39_s10  ;;  %s3219_s12 = int_to_ptr.vmem [resolvable:$true] %s27_s12 }
   0x4   :  { %s3069_s15 = scalar_lea.hbm %s3900_s3, 6400 }
   0x5   :  { %p3070_p0 = scmp.ne.s32.totalorder %s3900_s3, %s3069_s15  ;;  %p3073_p1 = scmp.lt.u32.totalorder %s3069_s15, %s3900_s3 }
   0x7   :  { %p3075_p2 = pnand %p3073_p1, %p3070_p0 }
   0x9   :  { %3078 = shalt.err (!%p3075_p2)
}
   0xa   :  { %s3079_s20 = scalar_lea.vmem %s40_s10, 6400  ;;  %p3084_p4 = scmp.lt.s32.totalorder %s40_s10, %s40_s10 }
   0xb   :  { %p3080_p3 = scmp.ne.s32.totalorder %s40_s10, %s3079_s20  ;;  %p3085_p5 = scmp.lt.s32.totalorder %s3079_s20, %s3079_s20 }
   0xd   :  { %p3086_p6 = por %p3085_p5, %p3084_p4 }
   0xf   :  { %p3087_p7 = pnand %p3086_p6, %p3080_p3 }
  0x11   :  { %3090 = shalt.err (!%p3087_p7)
}
  0x12   :  { %s3165_s21 = smov 256   ;;  %s3166_s22 = smov 16  }
  0x13   :  { %45 = dma.hbm_to_vmem [thread:$0]  %s3900_s3, 6400, %s40_s10, [#allocation5], %s3165_s21, %s3165_s21, %s3166_s22  }
  0x14   :  { %s3091_s27 = scalar_lea.hbm %s3899_s2, 6400 }
  0x15   :  { %p3092_p8 = scmp.ne.s32.totalorder %s3899_s2, %s3091_s27  ;;  %p3095_p9 = scmp.lt.u32.totalorder %s3091_s27, %s3899_s2 }
  0x17   :  { %p3097_p10 = pnand %p3095_p9, %p3092_p8 }
  0x19   :  { %3100 = shalt.err (!%p3097_p10)
}
  0x1a   :  { %s3101_s13 = scalar_lea.vmem %s3219_s12, 6400  ;;  %p3106_p12 = scmp.lt.s32.totalorder %s3219_s12, %s3219_s12 }
  0x1b   :  { %p3102_p11 = scmp.ne.s32.totalorder %s3219_s12, %s3101_s13  ;;  %p3107_p13 = scmp.lt.s32.totalorder %s3101_s13, %s3101_s13 }
  0x1d   :  { %p3108_p0 = por %p3107_p13, %p3106_p12 }
  0x1f   :  { %p3109_p1 = pnand %p3108_p0, %p3102_p11 }
  0x21   :  { %3112 = shalt.err (!%p3109_p1)
}
  0x22   :  { %33 = dma.hbm_to_vmem [thread:$0]  %s3899_s2, 6400, %s3219_s12, [#allocation3], %s3165_s21, %s3165_s21, %s3166_s22  }
  0x23   :  { %s3167_s14 = smov [#allocation6]   ;;  %s3168_s16 = smov [#allocation7]  }
  0x24   :  { %s51_s15 = sshll.u32 %s3167_s14, 4  ;;  %s63_s17 = sshll.u32 %s3168_s16, 4  ;;  %s52_s15 = int_to_ptr.vmem [resolvable:$true] %s51_s15  ;;  %s3256_s17 = int_to_ptr.vmem [resolvable:$true] %s63_s17 }
  0x25   :  { %s3113_s20 = scalar_lea.hbm %s3901_s4, 6400 }
  0x26   :  { %p3114_p2 = scmp.ne.s32.totalorder %s3901_s4, %s3113_s20  ;;  %p3117_p3 = scmp.lt.u32.totalorder %s3113_s20, %s3901_s4 }
  0x28   :  { %p3119_p4 = pnand %p3117_p3, %p3114_p2 }
  0x2a   :  { %3122 = shalt.err (!%p3119_p4)
}
  0x2b   :  { %s3123_s2 = scalar_lea.vmem %s52_s15, 6400  ;;  %p3128_p6 = scmp.lt.s32.totalorder %s52_s15, %s52_s15 }
  0x2c   :  { %p3124_p5 = scmp.ne.s32.totalorder %s52_s15, %s3123_s2  ;;  %p3129_p7 = scmp.lt.s32.totalorder %s3123_s2, %s3123_s2 }
  0x2e   :  { %p3130_p8 = por %p3129_p7, %p3128_p6 }
  0x30   :  { %p3131_p9 = pnand %p3130_p8, %p3124_p5 }
  0x32   :  { %3134 = shalt.err (!%p3131_p9)
}
  0x33   :  { %57 = dma.hbm_to_vmem [thread:$0]  %s3901_s4, 6400, %s52_s15, [#allocation5], %s3165_s21, %s3165_s21, %s3166_s22  }
  0x34   :  { %s3135_s30 = scalar_lea.hbm %s3902_s5, 6400 }
  0x35   :  { %p3136_p10 = scmp.ne.s32.totalorder %s3902_s5, %s3135_s30  ;;  %p3139_p11 = scmp.lt.u32.totalorder %s3135_s30, %s3902_s5 }
  0x37   :  { %p3141_p12 = pnand %p3139_p11, %p3136_p10 }
  0x39   :  { %3144 = shalt.err (!%p3141_p12)
}
  0x3a   :  { %s3145_s14 = scalar_lea.vmem %s3256_s17, 6400  ;;  %p3150_p0 = scmp.lt.s32.totalorder %s3256_s17, %s3256_s17 }
  0x3b   :  { %p3146_p13 = scmp.ne.s32.totalorder %s3256_s17, %s3145_s14  ;;  %p3151_p1 = scmp.lt.s32.totalorder %s3145_s14, %s3145_s14 }
  0x3d   :  { %p3152_p2 = por %p3151_p1, %p3150_p0 }
  0x3f   :  { %p3153_p3 = pnand %p3152_p2, %p3146_p13 }
  0x41   :  { %3156 = shalt.err (!%p3153_p3)
}
  0x42   :  { %69 = dma.hbm_to_vmem [thread:$0]  %s3902_s5, 6400, %s3256_s17, [#allocation8], %s3165_s21, %s3165_s21, %s3166_s22  }
  0x43   :  { %3157 = dma.done.wait [#allocation3], 6400  }
  0x44   :  { %3158 = vsyncadd [#allocation3], 4294960896 }
  0x45   :  { %3159 = dma.done.wait [#allocation5], 12800  }
  0x46   :  { %3160 = vsyncadd [#allocation5], 4294954496 }
  0x47   :  { %3161 = dma.done.wait [#allocation8], 6400  }
  0x48   :  { %3162 = vsyncadd [#allocation8], 4294960896  ;;  %v3293_v0 = vld [vmem:[#allocation2 + $0x4] ss:$16 sps:$4 sm:$0xff]   ;;  %v3295_v1 = vld [vmem:[#allocation2 + $0xc] ss:$16 sps:$4 sm:$0xff]  }
  0x49   :  { %486 = vmatprep.subr.bf16.mxu0 %v3293_v0  ;;  %v3298_v2 = vld [vmem:[#allocation2] ss:$16 sps:$4 sm:$0xff]   ;;  %v3300_v3 = vld [vmem:[#allocation2 + $0x8] ss:$16 sps:$4 sm:$0xff]   ;;  %529 = vmatprep.subr.bf16.mxu1 %v3295_v1  ;;  %v3303_v4 = vld [vmem:[#allocation2 + $0x24] ss:$16 sps:$4 sm:$0xff]  }
  0x4a   :  { %487 = vmatpush1.bf16.msra.mxu0 %v3298_v2  ;;  %530 = vmatpush1.bf16.msra.mxu1 %v3300_v3  ;;  %v3307_v5 = vld [vmem:[#allocation2 + $0x2c] ss:$16 sps:$4 sm:$0xff]   ;;  %v3309_v6 = vld [vmem:[#allocation2 + $0x20] ss:$16 sps:$4 sm:$0xff]   ;;  %v3312_v7 = vld [vmem:[#allocation2 + $0x28] ss:$16 sps:$4 sm:$0xff]  }
  0x4b   :  { %488 = vmatprep.subr.bf16.mxu0 %v3303_v4  ;;  %531 = vmatprep.subr.bf16.mxu1 %v3307_v5  ;;  %v3315_v8 = vld [vmem:[#allocation2 + $0x44] ss:$16 sps:$4 sm:$0xff]   ;;  %v3317_v9 = vld [vmem:[#allocation2 + $0x4c] ss:$16 sps:$4 sm:$0xff]   ;;  %v3319_v10 = vld [vmem:[#allocation2 + $0x40] ss:$16 sps:$4 sm:$0xff]  }
  0x4c   :  { %v3321_v11 = vld [vmem:[#allocation2 + $0x48] ss:$16 sps:$4 sm:$0xff]   ;;  %v3325_v12 = vld [vmem:[#allocation2 + $0x64] ss:$16 sps:$4 sm:$0xff]   ;;  %v3329_v13 = vld [vmem:[#allocation2 + $0x6c] ss:$16 sps:$4 sm:$0xff]  }
  0x4d   :  { %v3331_v14 = vld [vmem:[#allocation2 + $0x60] ss:$16 sps:$4 sm:$0xff]   ;;  %v3335_v15 = vld [vmem:[#allocation2 + $0x68] ss:$16 sps:$4 sm:$0xff]   ;;  %v3337_v16 = vld [vmem:[#allocation2 + $0x84] ss:$16 sps:$4 sm:$0xff]  }
  0x4e   :  { %489 = vmatpush1.bf16.msra.mxu0 %v3309_v6  ;;  %532 = vmatpush1.bf16.msra.mxu1 %v3312_v7  ;;  %v3341_v17 = vld [vmem:[#allocation2 + $0x8c] ss:$16 sps:$4 sm:$0xff]   ;;  %v3343_v18 = vld [vmem:[#allocation2 + $0x80] ss:$16 sps:$4 sm:$0xff]   ;;  %v3345_v19 = vld [vmem:[#allocation2 + $0x88] ss:$16 sps:$4 sm:$0xff]  }
  0x4f   :  { %490 = vmatprep.subr.bf16.mxu0 %v3315_v8  ;;  %533 = vmatprep.subr.bf16.mxu1 %v3317_v9  ;;  %v3349_v20 = vld [vmem:[#allocation2 + $0xa4] ss:$16 sps:$4 sm:$0xff]   ;;  %v3353_v21 = vld [vmem:[#allocation2 + $0xac] ss:$16 sps:$4 sm:$0xff]   ;;  %v3355_v22 = vld [vmem:[#allocation2 + $0xa0] ss:$16 sps:$4 sm:$0xff]  }
  0x50   :  { %v3359_v23 = vld [vmem:[#allocation2 + $0xa8] ss:$16 sps:$4 sm:$0xff]   ;;  %v3361_v24 = vld [vmem:[#allocation2 + $0xc4] ss:$16 sps:$4 sm:$0xff]   ;;  %v3365_v25 = vld [vmem:[#allocation2 + $0xcc] ss:$16 sps:$4 sm:$0xff]  }
  0x51   :  { %v3367_v26 = vld [vmem:[#allocation2 + $0xc0] ss:$16 sps:$4 sm:$0xff]   ;;  %v3369_v27 = vld [vmem:[#allocation2 + $0xc8] ss:$16 sps:$4 sm:$0xff]   ;;  %v3373_v28 = vld [vmem:[#allocation2 + $0xe4] ss:$16 sps:$4 sm:$0xff]  }
  0x52   :  { %491 = vmatpush1.bf16.msra.mxu0 %v3319_v10  ;;  %534 = vmatpush1.bf16.msra.mxu1 %v3321_v11  ;;  %v3377_v29 = vld [vmem:[#allocation2 + $0xec] ss:$16 sps:$4 sm:$0xff]   ;;  %v3379_v30 = vld [vmem:[#allocation2 + $0xe0] ss:$16 sps:$4 sm:$0xff]   ;;  %v3383_v31 = vld [vmem:[#allocation2 + $0xe8] ss:$16 sps:$4 sm:$0xff]  }
  0x53   :  { %492 = vmatprep.subr.bf16.mxu0 %v3325_v12  ;;  %535 = vmatprep.subr.bf16.mxu1 %v3329_v13  ;;  %v3385_v32 = vld [vmem:[#allocation2 + $0x104] ss:$16 sps:$4 sm:$0xff]   ;;  %v3389_v33 = vld [vmem:[#allocation2 + $0x10c] ss:$16 sps:$4 sm:$0xff]   ;;  %v3393_v34 = vld [vmem:[#allocation2 + $0x100] ss:$16 sps:$4 sm:$0xff]  }
  0x54   :  { %v3395_v35 = vld [vmem:[#allocation2 + $0x108] ss:$16 sps:$4 sm:$0xff]   ;;  %v3402_v37 = vld [vmem:[#allocation2 + $0x124] ss:$16 sps:$4 sm:$0xff]   ;;  %v3404_v38 = vld [vmem:[#allocation2 + $0x12c] ss:$16 sps:$4 sm:$0xff]  }
  0x55   :  { %v88_v36 = vld [vmem:[%s3897_s0 + $0x8] sm:$0xff]  ;;  %v90_v39 = vld [vmem:[%s3897_s0 + $0x18] sm:$0xff]  ;;  %v3409_v40 = vld [vmem:[#allocation2 + $0x120] ss:$16 sps:$4 sm:$0xff]   ;;  %vm469_vm0 = vcmask 588800   ;;  %vm473_vm1 = vcmask 1043456  }
  0x56   :  { %493 = vmatpush1.bf16.msra.mxu0 %v3331_v14  ;;  %536 = vmatpush1.bf16.msra.mxu1 %v3335_v15  ;;  %v3411_v41 = vpack.c.bf16 %v90_v39, %v88_v36  ;;  %v3413_v42 = vld [vmem:[#allocation2 + $0x128] ss:$16 sps:$4 sm:$0xff]   ;;  %v87_v45 = vld [vmem:[%s3897_s0] sm:$0xff]  ;;  %v89_v46 = vld [vmem:[%s3897_s0 + $0x10] sm:$0xff] }
  0x57   :  { %494 = vmatprep.subr.bf16.mxu0 %v3337_v16  ;;  %537 = vmatprep.subr.bf16.mxu1 %v3341_v17  ;;  %v3427_v47 = vld [vmem:[#allocation2 + $0x144] ss:$16 sps:$4 sm:$0xff]   ;;  %v3429_v48 = vld [vmem:[#allocation2 + $0x14c] ss:$16 sps:$4 sm:$0xff]   ;;  %v3431_v51 = vld [vmem:[#allocation2 + $0x140] ss:$16 sps:$4 sm:$0xff]   ;;  %v3433_v52 = vpack.c.bf16 %v89_v46, %v87_v45 }
  0x58   :  { %v94_v43 = vunpack.c.l.bf16 %v3411_v41  ;;  %v96_v44 = vunpack.c.h.bf16 %v3411_v41  ;;  %v3437_v53 = vld [vmem:[#allocation2 + $0x148] ss:$16 sps:$4 sm:$0xff]   ;;  %v3439_v54 = vld [vmem:[#allocation2 + $0x164] ss:$16 sps:$4 sm:$0xff]   ;;  %v3443_v56 = vld [vmem:[#allocation2 + $0x16c] ss:$16 sps:$4 sm:$0xff]  }
  0x59   :  { %v167_v57 = vld [vmem:[#allocation2 + $0x180] sm:$0xff]  ;;  %v168_v58 = vld [vmem:[#allocation2 + $0x188] sm:$0xff]  ;;  %v93_v59 = vunpack.c.l.bf16 %v3433_v52  ;;  %v95_v60 = vunpack.c.h.bf16 %v3433_v52 }
  0x5a   :  { %495 = vmatpush1.bf16.msra.mxu0 %v3343_v18  ;;  %538 = vmatpush1.bf16.msra.mxu1 %v3345_v19  ;;  %v98_v49 = vsub.f32 %v88_v36, %v94_v43  ;;  %v100_v50 = vsub.f32 %v90_v39, %v96_v44  ;;  %v3451_v61 = vld [vmem:[#allocation2 + $0x160] ss:$16 sps:$4 sm:$0xff]   ;;  %v3453_v62 = vld [vmem:[#allocation2 + $0x168] ss:$16 sps:$4 sm:$0xff]   ;;  %v3455_v63 = vcombine.high %v167_v57, %v167_v57 }
  0x5b   :  { %496 = vmatprep.subr.bf16.mxu0 %v3349_v20  ;;  %539 = vmatprep.subr.bf16.mxu1 %v3353_v21  ;;  %v3459_v36 = vcombine.high %v168_v58, %v168_v58  ;;  %v2405_v39 = vcombine.low %v167_v57, %v167_v57  ;;  %v2407_v43 = vcombine.low %v168_v58, %v168_v58  ;;  %v218_v58 = vld [vmem:[#allocation4 + $0x188] sm:$0xff] }
  0x5c   :  { %v102_v55 = vpack.c.bf16 %v100_v50, %v98_v49  ;;  %v97_v44 = vsub.f32 %v87_v45, %v93_v59  ;;  %v99_v49 = vsub.f32 %v89_v46, %v95_v60  ;;  %v2874_v45 = vld [vmem:[#allocation4 + $0x14c] ss:$16 sps:$4 sm:$0xff]   ;;  %v2875_v60 = vld [vmem:[#allocation4 + $0x160] ss:$16 sps:$4 sm:$0xff]  }
  0x5d   :  { %v3468_v50 = vsel %vm473_vm1, %v2405_v39, 0  ;;  %v104_v46 = vld [vmem:[%s3898_s1 + $0x8] sm:$0xff]  ;;  %v2467_v39 = vcombine.low %v218_v58, %v218_v58 }
  0x5e   :  { %497 = vmatpush1.bf16.msra.mxu0 %v3355_v22  ;;  %540 = vmatpush1.bf16.msra.mxu1 %v3359_v23  ;;  %v101_v57 = vpack.c.bf16 %v99_v49, %v97_v44 }
  0x5f   :  { %498 = vmatprep.subr.bf16.mxu0 %v3361_v24  ;;  %541 = vmatprep.subr.bf16.mxu1 %v3365_v25 }
  0x60   :  { %2410 = vmatprep.mubr.msk.bf16.mxu0 %vm469_vm0, %v102_v55  ;;  %2412 = vmatprep.mubr.msk.bf16.mxu1 %vm469_vm0, %v102_v55  ;;  %v3471_v55 = vsel %vm473_vm1, %v2407_v43, 0 }
  0x62   :  { %499 = vmatpush1.bf16.msra.mxu0 %v3367_v26  ;;  %542 = vmatpush1.bf16.msra.mxu1 %v3369_v27 }
  0x63   :  { %500 = vmatprep.subr.bf16.mxu0 %v3373_v28  ;;  %543 = vmatprep.subr.bf16.mxu1 %v3377_v29 }
  0x66   :  { %501 = vmatpush1.bf16.msra.mxu0 %v3379_v30  ;;  %544 = vmatpush1.bf16.msra.mxu1 %v3383_v31 }
  0x67   :  { %502 = vmatprep.subr.bf16.mxu0 %v3385_v32  ;;  %545 = vmatprep.subr.bf16.mxu1 %v3389_v33 }
  0x6a   :  { %503 = vmatpush1.bf16.msra.mxu0 %v3393_v34  ;;  %546 = vmatpush1.bf16.msra.mxu1 %v3395_v35 }
  0x6b   :  { %504 = vmatprep.subr.bf16.mxu0 %v3402_v37  ;;  %547 = vmatprep.subr.bf16.mxu1 %v3404_v38 }
  0x6e   :  { %505 = vmatpush1.bf16.msra.mxu0 %v3409_v40  ;;  %548 = vmatpush1.bf16.msra.mxu1 %v3413_v42 }
  0x6f   :  { %506 = vmatprep.subr.bf16.mxu0 %v3427_v47  ;;  %549 = vmatprep.subr.bf16.mxu1 %v3429_v48 }
  0x72   :  { %507 = vmatpush1.bf16.msra.mxu0 %v3431_v51  ;;  %550 = vmatpush1.bf16.msra.mxu1 %v3437_v53 }
  0x73   :  { %508 = vmatprep.subr.bf16.mxu0 %v3439_v54  ;;  %551 = vmatprep.subr.bf16.mxu1 %v3443_v56 }
  0x76   :  { %509 = vmatpush1.bf16.msra.mxu0 %v3451_v61  ;;  %552 = vmatpush1.bf16.msra.mxu1 %v3453_v62 }
  0x77   :  { %2409 = vmatprep.subr.msk.bf16.mxu0 %vm473_vm1, %v3455_v63  ;;  %2411 = vmatprep.subr.msk.bf16.mxu1 %vm473_vm1, %v3459_v36 }
  0x7a   :  { %511 = vmatpush1.bf16.msra.mxu0 %v3468_v50  ;;  %554 = vmatpush1.bf16.msra.mxu1 %v3471_v55 }
  0x7b   :  { %575 = vmatprep.subr.bf16.mxu0 %v3293_v0  ;;  %618 = vmatprep.subr.bf16.mxu1 %v3295_v1  ;;  %v2811_v0 = vld [vmem:[#allocation4 + $0x4] ss:$16 sps:$4 sm:$0xff]   ;;  %v2814_v1 = vld [vmem:[#allocation4 + $0xc] ss:$16 sps:$4 sm:$0xff]  }
  0x7d   :  { %519 = vmatmul.mubr.bf16.vlgmr.msra.gmra.mrb[0].mxu0 %v101_v57  ;;  %562 = vmatmul.mubr.bf16.vlgmr.msra.gmra.mrb[0].mxu1 %v101_v57  ;;  %v3555_v57 = vld [vmem:[#allocation6 + $0xc] ss:$16 sps:$4 sm:$0xff]  }
  0x7e   :  { %576 = vmatpush1.bf16.msra.mxu0 %v3298_v2  ;;  %619 = vmatpush1.bf16.msra.mxu1 %v3300_v3  ;;  %v2809_v2 = vld [vmem:[#allocation4] ss:$16 sps:$4 sm:$0xff]   ;;  %v2812_v3 = vld [vmem:[#allocation4 + $0x8] ss:$16 sps:$4 sm:$0xff]  }
  0x7f   :  { %577 = vmatprep.subr.bf16.mxu0 %v3303_v4  ;;  %620 = vmatprep.subr.bf16.mxu1 %v3307_v5  ;;  %v2817_v4 = vld [vmem:[#allocation4 + $0x24] ss:$16 sps:$4 sm:$0xff]   ;;  %v2820_v5 = vld [vmem:[#allocation4 + $0x2c] ss:$16 sps:$4 sm:$0xff]  }
  0x80   :  { %2414 = vmatprep.mubr.msk.bf16.mxu0 %vm469_vm0, %v3411_v41  ;;  %2416 = vmatprep.mubr.msk.bf16.mxu1 %vm469_vm0, %v3411_v41 }
  0x82   :  { %578 = vmatpush1.bf16.msra.mxu0 %v3309_v6  ;;  %621 = vmatpush1.bf16.msra.mxu1 %v3312_v7  ;;  %v2815_v6 = vld [vmem:[#allocation4 + $0x20] ss:$16 sps:$4 sm:$0xff]   ;;  %v2818_v7 = vld [vmem:[#allocation4 + $0x28] ss:$16 sps:$4 sm:$0xff]  }
  0x83   :  { %579 = vmatprep.subr.bf16.mxu0 %v3315_v8  ;;  %622 = vmatprep.subr.bf16.mxu1 %v3317_v9  ;;  %v2823_v8 = vld [vmem:[#allocation4 + $0x44] ss:$16 sps:$4 sm:$0xff]   ;;  %v2826_v9 = vld [vmem:[#allocation4 + $0x4c] ss:$16 sps:$4 sm:$0xff]  }
  0x86   :  { %580 = vmatpush1.bf16.msra.mxu0 %v3319_v10  ;;  %623 = vmatpush1.bf16.msra.mxu1 %v3321_v11  ;;  %v2821_v10 = vld [vmem:[#allocation4 + $0x40] ss:$16 sps:$4 sm:$0xff]   ;;  %v2824_v11 = vld [vmem:[#allocation4 + $0x48] ss:$16 sps:$4 sm:$0xff]  }
  0x87   :  { %581 = vmatprep.subr.bf16.mxu0 %v3325_v12  ;;  %624 = vmatprep.subr.bf16.mxu1 %v3329_v13  ;;  %v2829_v12 = vld [vmem:[#allocation4 + $0x64] ss:$16 sps:$4 sm:$0xff]   ;;  %v2832_v13 = vld [vmem:[#allocation4 + $0x6c] ss:$16 sps:$4 sm:$0xff]  }
  0x8a   :  { %582 = vmatpush1.bf16.msra.mxu0 %v3331_v14  ;;  %625 = vmatpush1.bf16.msra.mxu1 %v3335_v15  ;;  %v2827_v14 = vld [vmem:[#allocation4 + $0x60] ss:$16 sps:$4 sm:$0xff]   ;;  %v2830_v15 = vld [vmem:[#allocation4 + $0x68] ss:$16 sps:$4 sm:$0xff]  }
  0x8b   :  { %583 = vmatprep.subr.bf16.mxu0 %v3337_v16  ;;  %626 = vmatprep.subr.bf16.mxu1 %v3341_v17  ;;  %v2835_v16 = vld [vmem:[#allocation4 + $0x84] ss:$16 sps:$4 sm:$0xff]   ;;  %v2838_v17 = vld [vmem:[#allocation4 + $0x8c] ss:$16 sps:$4 sm:$0xff]  }
  0x8e   :  { %584 = vmatpush1.bf16.msra.mxu0 %v3343_v18  ;;  %627 = vmatpush1.bf16.msra.mxu1 %v3345_v19  ;;  %v2833_v18 = vld [vmem:[#allocation4 + $0x80] ss:$16 sps:$4 sm:$0xff]   ;;  %v2836_v19 = vld [vmem:[#allocation4 + $0x88] ss:$16 sps:$4 sm:$0xff]  }
  0x8f   :  { %585 = vmatprep.subr.bf16.mxu0 %v3349_v20  ;;  %628 = vmatprep.subr.bf16.mxu1 %v3353_v21  ;;  %v2841_v20 = vld [vmem:[#allocation4 + $0xa4] ss:$16 sps:$4 sm:$0xff]   ;;  %v2844_v21 = vld [vmem:[#allocation4 + $0xac] ss:$16 sps:$4 sm:$0xff]  }
  0x92   :  { %586 = vmatpush1.bf16.msra.mxu0 %v3355_v22  ;;  %629 = vmatpush1.bf16.msra.mxu1 %v3359_v23  ;;  %v2839_v22 = vld [vmem:[#allocation4 + $0xa0] ss:$16 sps:$4 sm:$0xff]   ;;  %v2842_v23 = vld [vmem:[#allocation4 + $0xa8] ss:$16 sps:$4 sm:$0xff]  }
  0x93   :  { %587 = vmatprep.subr.bf16.mxu0 %v3361_v24  ;;  %630 = vmatprep.subr.bf16.mxu1 %v3365_v25  ;;  %v2847_v24 = vld [vmem:[#allocation4 + $0xc4] ss:$16 sps:$4 sm:$0xff]   ;;  %v2850_v25 = vld [vmem:[#allocation4 + $0xcc] ss:$16 sps:$4 sm:$0xff]  }
  0x96   :  { %588 = vmatpush1.bf16.msra.mxu0 %v3367_v26  ;;  %631 = vmatpush1.bf16.msra.mxu1 %v3369_v27  ;;  %v2845_v26 = vld [vmem:[#allocation4 + $0xc0] ss:$16 sps:$4 sm:$0xff]   ;;  %v2848_v27 = vld [vmem:[#allocation4 + $0xc8] ss:$16 sps:$4 sm:$0xff]  }
  0x97   :  { %589 = vmatprep.subr.bf16.mxu0 %v3373_v28  ;;  %632 = vmatprep.subr.bf16.mxu1 %v3377_v29  ;;  %v2853_v28 = vld [vmem:[#allocation4 + $0xe4] ss:$16 sps:$4 sm:$0xff]   ;;  %v2856_v29 = vld [vmem:[#allocation4 + $0xec] ss:$16 sps:$4 sm:$0xff]  }
  0x9a   :  { %590 = vmatpush1.bf16.msra.mxu0 %v3379_v30  ;;  %633 = vmatpush1.bf16.msra.mxu1 %v3383_v31  ;;  %v2851_v30 = vld [vmem:[#allocation4 + $0xe0] ss:$16 sps:$4 sm:$0xff]   ;;  %v2854_v31 = vld [vmem:[#allocation4 + $0xe8] ss:$16 sps:$4 sm:$0xff]  }
  0x9b   :  { %591 = vmatprep.subr.bf16.mxu0 %v3385_v32  ;;  %634 = vmatprep.subr.bf16.mxu1 %v3389_v33  ;;  %v2859_v32 = vld [vmem:[#allocation4 + $0x104] ss:$16 sps:$4 sm:$0xff]   ;;  %v2862_v33 = vld [vmem:[#allocation4 + $0x10c] ss:$16 sps:$4 sm:$0xff]  }
  0x9e   :  { %592 = vmatpush1.bf16.msra.mxu0 %v3393_v34  ;;  %635 = vmatpush1.bf16.msra.mxu1 %v3395_v35  ;;  %v2857_v34 = vld [vmem:[#allocation4 + $0x100] ss:$16 sps:$4 sm:$0xff]   ;;  %v2860_v35 = vld [vmem:[#allocation4 + $0x108] ss:$16 sps:$4 sm:$0xff]  }
  0x9f   :  { %593 = vmatprep.subr.bf16.mxu0 %v3402_v37  ;;  %636 = vmatprep.subr.bf16.mxu1 %v3404_v38  ;;  %v2865_v37 = vld [vmem:[#allocation4 + $0x124] ss:$16 sps:$4 sm:$0xff]   ;;  %v2868_v38 = vld [vmem:[#allocation4 + $0x12c] ss:$16 sps:$4 sm:$0xff]  }
  0xa2   :  { %594 = vmatpush1.bf16.msra.mxu0 %v3409_v40  ;;  %637 = vmatpush1.bf16.msra.mxu1 %v3413_v42  ;;  %v2863_v40 = vld [vmem:[#allocation4 + $0x120] ss:$16 sps:$4 sm:$0xff]   ;;  %v2871_v42 = vld [vmem:[#allocation4 + $0x144] ss:$16 sps:$4 sm:$0xff]  }
  0xa3   :  { %595 = vmatprep.subr.bf16.mxu0 %v3427_v47  ;;  %638 = vmatprep.subr.bf16.mxu1 %v3429_v48  ;;  %v106_v47 = vld [vmem:[%s3898_s1 + $0x18] sm:$0xff]  ;;  %v2869_v48 = vld [vmem:[#allocation4 + $0x140] ss:$16 sps:$4 sm:$0xff]  }
  0xa4   :  { %v3545_v59 = vpack.c.bf16 %v106_v47, %v104_v46 }
  0xa6   :  { %596 = vmatpush1.bf16.msra.mxu0 %v3431_v51  ;;  %639 = vmatpush1.bf16.msra.mxu1 %v3437_v53  ;;  %v2872_v51 = vld [vmem:[#allocation4 + $0x148] ss:$16 sps:$4 sm:$0xff]   ;;  %v2877_v53 = vld [vmem:[#allocation4 + $0x164] ss:$16 sps:$4 sm:$0xff]   ;;  %v110_v43 = vunpack.c.l.bf16 %v3545_v59  ;;  %v112_v44 = vunpack.c.h.bf16 %v3545_v59 }
  0xa7   :  { %597 = vmatprep.subr.bf16.mxu0 %v3439_v54  ;;  %640 = vmatprep.subr.bf16.mxu1 %v3443_v56  ;;  %v2880_v54 = vld [vmem:[#allocation4 + $0x16c] ss:$16 sps:$4 sm:$0xff]   ;;  %v217_v56 = vld [vmem:[#allocation4 + $0x180] sm:$0xff] }
  0xaa   :  { %598 = vmatpush1.bf16.msra.mxu0 %v3451_v61  ;;  %641 = vmatpush1.bf16.msra.mxu1 %v3453_v62  ;;  %v2878_v61 = vld [vmem:[#allocation4 + $0x168] ss:$16 sps:$4 sm:$0xff]   ;;  %v2466_v62 = vcombine.high %v217_v56, %v217_v56 }
  0xab   :  { %2413 = vmatprep.subr.msk.bf16.mxu0 %vm473_vm1, %v3455_v63  ;;  %2415 = vmatprep.subr.msk.bf16.mxu1 %vm473_vm1, %v3459_v36  ;;  %v2468_v63 = vcombine.high %v218_v58, %v218_v58  ;;  %v2465_v36 = vcombine.low %v217_v56, %v217_v56  ;;  %v3697_v56 = vld [vmem:[#allocation6 + $0x16c] ss:$16 sps:$4 sm:$0xff]   ;;  %v1065_v58 = vld [vmem:[#allocation6 + $0x180] sm:$0xff] }
  0xad   :  { %v912_v49 = vsel %vm473_vm1, %v2465_v36, 0  ;;  %v3705_v36 = vld [vmem:[#allocation6 + $0x168] ss:$16 sps:$4 sm:$0xff]  }
  0xae   :  { %600 = vmatpush1.bf16.msra.mxu0 %v3468_v50  ;;  %643 = vmatpush1.bf16.msra.mxu1 %v3471_v55  ;;  %v918_v50 = vsel %vm473_vm1, %v2467_v39, 0  ;;  %v3553_v55 = vld [vmem:[#allocation6 + $0x4] ss:$16 sps:$4 sm:$0xff]   ;;  %v3707_v39 = vcombine.high %v1065_v58, %v1065_v58 }
  0xaf   :  { %923 = vmatprep.subr.bf16.mxu0 %v2811_v0  ;;  %966 = vmatprep.subr.bf16.mxu1 %v2814_v1  ;;  %v114_v0 = vsub.f32 %v104_v46, %v110_v43  ;;  %v116_v1 = vsub.f32 %v106_v47, %v112_v44  ;;  %v3681_v46 = vld [vmem:[#allocation6 + $0x144] ss:$16 sps:$4 sm:$0xff]   ;;  %v3683_v47 = vld [vmem:[#allocation6 + $0x14c] ss:$16 sps:$4 sm:$0xff]   ;;  %v2521_v44 = vcombine.low %v1065_v58, %v1065_v58  ;;  %v3030_v58 = vld [vmem:[#allocation7 + $0x168] ss:$16 sps:$4 sm:$0xff]  }
  0xb1   :  { %608 = vmatmul.mubr.bf16.vlgmr.msra.gmra.mrb[0].mxu0 %v3433_v52  ;;  %651 = vmatmul.mubr.bf16.vlgmr.msra.gmra.mrb[0].mxu1 %v3433_v52 }
  0xb2   :  { %924 = vmatpush1.bf16.msra.mxu0 %v2809_v2  ;;  %967 = vmatpush1.bf16.msra.mxu1 %v2812_v3  ;;  %v3557_v2 = vld [vmem:[#allocation6] ss:$16 sps:$4 sm:$0xff]   ;;  %v3559_v3 = vld [vmem:[#allocation6 + $0x8] ss:$16 sps:$4 sm:$0xff]  }
  0xb3   :  { %925 = vmatprep.subr.bf16.mxu0 %v2817_v4  ;;  %968 = vmatprep.subr.bf16.mxu1 %v2820_v5  ;;  %v3563_v4 = vld [vmem:[#allocation6 + $0x24] ss:$16 sps:$4 sm:$0xff]   ;;  %v3565_v5 = vld [vmem:[#allocation6 + $0x2c] ss:$16 sps:$4 sm:$0xff]  }
  0xb4   :  { %2470 = vmatprep.mubr.msk.bf16.mxu0 %vm469_vm0, %v3411_v41  ;;  %2472 = vmatprep.mubr.msk.bf16.mxu1 %vm469_vm0, %v3411_v41  ;;  %v2866_v41 = vld [vmem:[#allocation4 + $0x128] ss:$16 sps:$4 sm:$0xff]  }
  0xb6   :  { %926 = vmatpush1.bf16.msra.mxu0 %v2815_v6  ;;  %969 = vmatpush1.bf16.msra.mxu1 %v2818_v7  ;;  %v118_v6 = vpack.c.bf16 %v116_v1, %v114_v0  ;;  %v3571_v7 = vld [vmem:[#allocation6 + $0x20] ss:$16 sps:$4 sm:$0xff]   ;;  %v1371_v1 = vsel %vm473_vm1, %v2521_v44, 0 }
  0xb7   :  { %927 = vmatprep.subr.bf16.mxu0 %v2823_v8  ;;  %970 = vmatprep.subr.bf16.mxu1 %v2826_v9  ;;  %v3573_v8 = vld [vmem:[#allocation6 + $0x28] ss:$16 sps:$4 sm:$0xff]   ;;  %v3577_v9 = vld [vmem:[#allocation6 + $0x44] ss:$16 sps:$4 sm:$0xff]  }
  0xb8   :  { %v3038_v44 = vld [vmem:[%s3903_s6] sm:$0xff]  }
  0xba   :  { %928 = vmatpush1.bf16.msra.mxu0 %v2821_v10  ;;  %971 = vmatpush1.bf16.msra.mxu1 %v2824_v11  ;;  %v3579_v10 = vld [vmem:[#allocation6 + $0x4c] ss:$16 sps:$4 sm:$0xff]   ;;  %v3587_v11 = vld [vmem:[#allocation6 + $0x48] ss:$16 sps:$4 sm:$0xff]  }
  0xbb   :  { %929 = vmatprep.subr.bf16.mxu0 %v2829_v12  ;;  %972 = vmatprep.subr.bf16.mxu1 %v2832_v13  ;;  %v3591_v12 = vld [vmem:[#allocation6 + $0x64] ss:$16 sps:$4 sm:$0xff]   ;;  %v3593_v13 = vld [vmem:[#allocation6 + $0x6c] ss:$16 sps:$4 sm:$0xff]  }
  0xbe   :  { %930 = vmatpush1.bf16.msra.mxu0 %v2827_v14  ;;  %973 = vmatpush1.bf16.msra.mxu1 %v2830_v15  ;;  %v3597_v14 = vld [vmem:[#allocation6 + $0x60] ss:$16 sps:$4 sm:$0xff]   ;;  %v3599_v15 = vld [vmem:[#allocation6 + $0x68] ss:$16 sps:$4 sm:$0xff]  }
  0xbf   :  { %931 = vmatprep.subr.bf16.mxu0 %v2835_v16  ;;  %974 = vmatprep.subr.bf16.mxu1 %v2838_v17  ;;  %v3603_v16 = vld [vmem:[#allocation6 + $0x84] ss:$16 sps:$4 sm:$0xff]   ;;  %v3605_v17 = vld [vmem:[#allocation6 + $0x8c] ss:$16 sps:$4 sm:$0xff]  }
  0xc2   :  { %932 = vmatpush1.bf16.msra.mxu0 %v2833_v18  ;;  %975 = vmatpush1.bf16.msra.mxu1 %v2836_v19  ;;  %v3609_v18 = vld [vmem:[#allocation6 + $0x80] ss:$16 sps:$4 sm:$0xff]   ;;  %v3611_v19 = vld [vmem:[#allocation6 + $0x88] ss:$16 sps:$4 sm:$0xff]  }
  0xc3   :  { %933 = vmatprep.subr.bf16.mxu0 %v2841_v20  ;;  %976 = vmatprep.subr.bf16.mxu1 %v2844_v21  ;;  %v3615_v20 = vld [vmem:[#allocation6 + $0xa4] ss:$16 sps:$4 sm:$0xff]   ;;  %v3617_v21 = vld [vmem:[#allocation6 + $0xac] ss:$16 sps:$4 sm:$0xff]  }
  0xc6   :  { %934 = vmatpush1.bf16.msra.mxu0 %v2839_v22  ;;  %977 = vmatpush1.bf16.msra.mxu1 %v2842_v23  ;;  %v3621_v22 = vld [vmem:[#allocation6 + $0xa0] ss:$16 sps:$4 sm:$0xff]   ;;  %v3623_v23 = vld [vmem:[#allocation6 + $0xa8] ss:$16 sps:$4 sm:$0xff]  }
  0xc7   :  { %935 = vmatprep.subr.bf16.mxu0 %v2847_v24  ;;  %978 = vmatprep.subr.bf16.mxu1 %v2850_v25  ;;  %v3627_v24 = vld [vmem:[#allocation6 + $0xc4] ss:$16 sps:$4 sm:$0xff]   ;;  %v3629_v25 = vld [vmem:[#allocation6 + $0xcc] ss:$16 sps:$4 sm:$0xff]  }
  0xca   :  { %936 = vmatpush1.bf16.msra.mxu0 %v2845_v26  ;;  %979 = vmatpush1.bf16.msra.mxu1 %v2848_v27  ;;  %v3633_v26 = vld [vmem:[#allocation6 + $0xc0] ss:$16 sps:$4 sm:$0xff]   ;;  %v3635_v27 = vld [vmem:[#allocation6 + $0xc8] ss:$16 sps:$4 sm:$0xff]  }
  0xcb   :  { %937 = vmatprep.subr.bf16.mxu0 %v2853_v28  ;;  %980 = vmatprep.subr.bf16.mxu1 %v2856_v29  ;;  %v3639_v28 = vld [vmem:[#allocation6 + $0xe4] ss:$16 sps:$4 sm:$0xff]   ;;  %v3641_v29 = vld [vmem:[#allocation6 + $0xec] ss:$16 sps:$4 sm:$0xff]  }
  0xce   :  { %938 = vmatpush1.bf16.msra.mxu0 %v2851_v30  ;;  %981 = vmatpush1.bf16.msra.mxu1 %v2854_v31  ;;  %v3645_v30 = vld [vmem:[#allocation6 + $0xe0] ss:$16 sps:$4 sm:$0xff]   ;;  %v3647_v31 = vld [vmem:[#allocation6 + $0xe8] ss:$16 sps:$4 sm:$0xff]  }
  0xcf   :  { %939 = vmatprep.subr.bf16.mxu0 %v2859_v32  ;;  %982 = vmatprep.subr.bf16.mxu1 %v2862_v33  ;;  %v3651_v32 = vld [vmem:[#allocation6 + $0x104] ss:$16 sps:$4 sm:$0xff]   ;;  %v3653_v33 = vld [vmem:[#allocation6 + $0x10c] ss:$16 sps:$4 sm:$0xff]  }
  0xd2   :  { %940 = vmatpush1.bf16.msra.mxu0 %v2857_v34  ;;  %983 = vmatpush1.bf16.msra.mxu1 %v2860_v35  ;;  %v3657_v34 = vld [vmem:[#allocation6 + $0x100] ss:$16 sps:$4 sm:$0xff]   ;;  %v3659_v35 = vld [vmem:[#allocation6 + $0x108] ss:$16 sps:$4 sm:$0xff]  }
  0xd3   :  { %941 = vmatprep.subr.bf16.mxu0 %v2865_v37  ;;  %984 = vmatprep.subr.bf16.mxu1 %v2868_v38  ;;  %v3663_v37 = vld [vmem:[#allocation6 + $0x124] ss:$16 sps:$4 sm:$0xff]   ;;  %v3665_v38 = vld [vmem:[#allocation6 + $0x12c] ss:$16 sps:$4 sm:$0xff]  }
  0xd6   :  { %942 = vmatpush1.bf16.msra.mxu0 %v2863_v40  ;;  %985 = vmatpush1.bf16.msra.mxu1 %v2866_v41  ;;  %v3667_v40 = vld [vmem:[#allocation6 + $0x120] ss:$16 sps:$4 sm:$0xff]   ;;  %v3671_v41 = vld [vmem:[#allocation6 + $0x128] ss:$16 sps:$4 sm:$0xff]  }
  0xd7   :  { %943 = vmatprep.subr.bf16.mxu0 %v2871_v42  ;;  %986 = vmatprep.subr.bf16.mxu1 %v2874_v45  ;;  %v103_v42 = vld [vmem:[%s3898_s1] sm:$0xff]  ;;  %v105_v45 = vld [vmem:[%s3898_s1 + $0x10] sm:$0xff] }
  0xda   :  { %944 = vmatpush1.bf16.msra.mxu0 %v2869_v48  ;;  %987 = vmatpush1.bf16.msra.mxu1 %v2872_v51  ;;  %v3685_v48 = vpack.c.bf16 %v105_v45, %v103_v42  ;;  %v3689_v51 = vld [vmem:[#allocation6 + $0x140] ss:$16 sps:$4 sm:$0xff]  }
  0xdb   :  { %945 = vmatprep.subr.bf16.mxu0 %v2877_v53  ;;  %988 = vmatprep.subr.bf16.mxu1 %v2880_v54  ;;  %v3691_v53 = vld [vmem:[#allocation6 + $0x148] ss:$16 sps:$4 sm:$0xff]   ;;  %v3695_v54 = vld [vmem:[#allocation6 + $0x164] ss:$16 sps:$4 sm:$0xff]  }
  0xdc   :  { %3909 = vst [vmem:[#allocation12_spill] sm:$0xff] %v3685_v48 }
  0xde   :  { %946 = vmatpush1.bf16.msra.mxu0 %v2875_v60  ;;  %989 = vmatpush1.bf16.msra.mxu1 %v2878_v61  ;;  %v1066_v60 = vld [vmem:[#allocation6 + $0x188] sm:$0xff]  ;;  %v109_v61 = vunpack.c.l.bf16 %v3685_v48 }
  0xdf   :  { %2469 = vmatprep.subr.msk.bf16.mxu0 %vm473_vm1, %v2466_v62  ;;  %2471 = vmatprep.subr.msk.bf16.mxu1 %vm473_vm1, %v2468_v63  ;;  %v111_v62 = vunpack.c.h.bf16 %v3685_v48  ;;  %v3703_v63 = vld [vmem:[#allocation6 + $0x160] ss:$16 sps:$4 sm:$0xff]   ;;  %v3711_v43 = vcombine.high %v1066_v60, %v1066_v60 }
  0xe1   :  { %v115_v0 = vsub.f32 %v105_v45, %v111_v62  ;;  %v3026_v45 = vld [vmem:[#allocation7 + $0x14c] ss:$16 sps:$4 sm:$0xff]  }
  0xe2   :  { %948 = vmatpush1.bf16.msra.mxu0 %v912_v49  ;;  %991 = vmatpush1.bf16.msra.mxu1 %v918_v50  ;;  %v2523_v49 = vcombine.low %v1066_v60, %v1066_v60  ;;  %v113_v50 = vsub.f32 %v103_v42, %v109_v61  ;;  %v3023_v42 = vld [vmem:[#allocation7 + $0x144] ss:$16 sps:$4 sm:$0xff]  }
  0xe3   :  { %1382 = vmatprep.subr.bf16.mxu0 %v3553_v55  ;;  %1425 = vmatprep.subr.bf16.mxu1 %v3555_v57 }
  0xe4   :  { %v117_v48 = vpack.c.bf16 %v115_v0, %v113_v50  ;;  %v3040_v50 = vld [vmem:[%s3903_s6 + $0x8] sm:$0xff]   ;;  %v3041_v0 = vld [vmem:[%s3903_s6 + $0x50] sm:$0xff]  }
  0xe5   :  { %956 = vmatmul.mubr.bf16.vlgmr.msra.gmra.mrb[0].mxu0 %v3433_v52  ;;  %999 = vmatmul.mubr.bf16.vlgmr.msra.gmra.mrb[0].mxu1 %v3433_v52  ;;  %v3585_v52 = vld [vmem:[#allocation6 + $0x40] ss:$16 sps:$4 sm:$0xff]  }
  0xe6   :  { %1383 = vmatpush1.bf16.msra.mxu0 %v3557_v2  ;;  %1426 = vmatpush1.bf16.msra.mxu1 %v3559_v3 }
  0xe7   :  { %1384 = vmatprep.subr.bf16.mxu0 %v3563_v4  ;;  %1427 = vmatprep.subr.bf16.mxu1 %v3565_v5 }
  0xe8   :  { %2526 = vmatprep.mubr.msk.bf16.mxu0 %vm469_vm0, %v118_v6  ;;  %2528 = vmatprep.mubr.msk.bf16.mxu1 %vm469_vm0, %v118_v6  ;;  %v1377_v6 = vsel %vm473_vm1, %v2523_v49, 0  ;;  %v3039_v49 = vld [vmem:[%s3903_s6 + $0x48] sm:$0xff]  }
  0xea   :  { %1385 = vmatpush1.bf16.msra.mxu0 %v3571_v7  ;;  %1428 = vmatpush1.bf16.msra.mxu1 %v3573_v8 }
  0xeb   :  { %1386 = vmatprep.subr.bf16.mxu0 %v3577_v9  ;;  %1429 = vmatprep.subr.bf16.mxu1 %v3579_v10 }
  0xee   :  { %1387 = vmatpush1.bf16.msra.mxu0 %v3585_v52  ;;  %1430 = vmatpush1.bf16.msra.mxu1 %v3587_v11 }
  0xef   :  { %1388 = vmatprep.subr.bf16.mxu0 %v3591_v12  ;;  %1431 = vmatprep.subr.bf16.mxu1 %v3593_v13 }
  0xf2   :  { %1389 = vmatpush1.bf16.msra.mxu0 %v3597_v14  ;;  %1432 = vmatpush1.bf16.msra.mxu1 %v3599_v15 }
  0xf3   :  { %1390 = vmatprep.subr.bf16.mxu0 %v3603_v16  ;;  %1433 = vmatprep.subr.bf16.mxu1 %v3605_v17 }
  0xf6   :  { %1391 = vmatpush1.bf16.msra.mxu0 %v3609_v18  ;;  %1434 = vmatpush1.bf16.msra.mxu1 %v3611_v19 }
  0xf7   :  { %1392 = vmatprep.subr.bf16.mxu0 %v3615_v20  ;;  %1435 = vmatprep.subr.bf16.mxu1 %v3617_v21 }
  0xfa   :  { %1393 = vmatpush1.bf16.msra.mxu0 %v3621_v22  ;;  %1436 = vmatpush1.bf16.msra.mxu1 %v3623_v23 }
  0xfb   :  { %1394 = vmatprep.subr.bf16.mxu0 %v3627_v24  ;;  %1437 = vmatprep.subr.bf16.mxu1 %v3629_v25 }
  0xfe   :  { %1395 = vmatpush1.bf16.msra.mxu0 %v3633_v26  ;;  %1438 = vmatpush1.bf16.msra.mxu1 %v3635_v27 }
  0xff   :  { %1396 = vmatprep.subr.bf16.mxu0 %v3639_v28  ;;  %1439 = vmatprep.subr.bf16.mxu1 %v3641_v29 }
 0x102   :  { %1397 = vmatpush1.bf16.msra.mxu0 %v3645_v30  ;;  %1440 = vmatpush1.bf16.msra.mxu1 %v3647_v31 }
 0x103   :  { %1398 = vmatprep.subr.bf16.mxu0 %v3651_v32  ;;  %1441 = vmatprep.subr.bf16.mxu1 %v3653_v33 }
 0x106   :  { %1399 = vmatpush1.bf16.msra.mxu0 %v3657_v34  ;;  %1442 = vmatpush1.bf16.msra.mxu1 %v3659_v35 }
 0x107   :  { %1400 = vmatprep.subr.bf16.mxu0 %v3663_v37  ;;  %1443 = vmatprep.subr.bf16.mxu1 %v3665_v38 }
 0x10a   :  { %1401 = vmatpush1.bf16.msra.mxu0 %v3667_v40  ;;  %1444 = vmatpush1.bf16.msra.mxu1 %v3671_v41 }
 0x10b   :  { %1402 = vmatprep.subr.bf16.mxu0 %v3681_v46  ;;  %1445 = vmatprep.subr.bf16.mxu1 %v3683_v47 }
 0x10e   :  { %1403 = vmatpush1.bf16.msra.mxu0 %v3689_v51  ;;  %1446 = vmatpush1.bf16.msra.mxu1 %v3691_v53 }
 0x10f   :  { %1404 = vmatprep.subr.bf16.mxu0 %v3695_v54  ;;  %1447 = vmatprep.subr.bf16.mxu1 %v3697_v56 }
 0x112   :  { %1405 = vmatpush1.bf16.msra.mxu0 %v3703_v63  ;;  %1448 = vmatpush1.bf16.msra.mxu1 %v3705_v36 }
 0x113   :  { %2525 = vmatprep.subr.msk.bf16.mxu0 %vm473_vm1, %v3707_v39  ;;  %2527 = vmatprep.subr.msk.bf16.mxu1 %vm473_vm1, %v3711_v43 }
 0x116   :  { %1407 = vmatpush1.bf16.msra.mxu0 %v1371_v1  ;;  %1450 = vmatpush1.bf16.msra.mxu1 %v1377_v6 }
 0x117   :  { %1471 = vmatprep.subr.bf16.mxu0 %v3553_v55  ;;  %1514 = vmatprep.subr.bf16.mxu1 %v3555_v57  ;;  %v2963_v55 = vld [vmem:[#allocation7 + $0x4] ss:$16 sps:$4 sm:$0xff]   ;;  %v2966_v57 = vld [vmem:[#allocation7 + $0xc] ss:$16 sps:$4 sm:$0xff]  }
 0x119   :  { %1415 = vmatmul.mubr.bf16.vlgmr.msra.gmra.mrb[0].mxu0 %v117_v48  ;;  %1458 = vmatmul.mubr.bf16.vlgmr.msra.gmra.mrb[0].mxu1 %v117_v48  ;;  %v3029_v48 = vld [vmem:[#allocation7 + $0x164] ss:$16 sps:$4 sm:$0xff]  }
 0x11a   :  { %1472 = vmatpush1.bf16.msra.mxu0 %v3557_v2  ;;  %1515 = vmatpush1.bf16.msra.mxu1 %v3559_v3  ;;  %v2961_v2 = vld [vmem:[#allocation7] ss:$16 sps:$4 sm:$0xff]   ;;  %v2964_v3 = vld [vmem:[#allocation7 + $0x8] ss:$16 sps:$4 sm:$0xff]  }
 0x11b   :  { %1473 = vmatprep.subr.bf16.mxu0 %v3563_v4  ;;  %1516 = vmatprep.subr.bf16.mxu1 %v3565_v5  ;;  %v2969_v4 = vld [vmem:[#allocation7 + $0x24] ss:$16 sps:$4 sm:$0xff]   ;;  %v2972_v5 = vld [vmem:[#allocation7 + $0x2c] ss:$16 sps:$4 sm:$0xff]  }
 0x11c   :  { %2530 = vmatprep.mubr.msk.bf16.mxu0 %vm469_vm0, %v3545_v59  ;;  %2532 = vmatprep.mubr.msk.bf16.mxu1 %vm469_vm0, %v3545_v59 }
 0x11e   :  { %1474 = vmatpush1.bf16.msra.mxu0 %v3571_v7  ;;  %1517 = vmatpush1.bf16.msra.mxu1 %v3573_v8  ;;  %v3910_v7 = vld [vmem:[#allocation12_spill] sm:$0xff] }
 0x11f   :  { %1475 = vmatprep.subr.bf16.mxu0 %v3577_v9  ;;  %1518 = vmatprep.subr.bf16.mxu1 %v3579_v10  ;;  %v2967_v8 = vld [vmem:[#allocation7 + $0x20] ss:$16 sps:$4 sm:$0xff]   ;;  %v2970_v9 = vld [vmem:[#allocation7 + $0x28] ss:$16 sps:$4 sm:$0xff]   ;;  %v2975_v10 = vld [vmem:[#allocation7 + $0x44] ss:$16 sps:$4 sm:$0xff]  }
 0x122   :  { %1476 = vmatpush1.bf16.msra.mxu0 %v3585_v52  ;;  %1519 = vmatpush1.bf16.msra.mxu1 %v3587_v11  ;;  %v2978_v52 = vld [vmem:[#allocation7 + $0x4c] ss:$16 sps:$4 sm:$0xff]   ;;  %v2973_v11 = vld [vmem:[#allocation7 + $0x40] ss:$16 sps:$4 sm:$0xff]  }
 0x123   :  { %1477 = vmatprep.subr.bf16.mxu0 %v3591_v12  ;;  %1520 = vmatprep.subr.bf16.mxu1 %v3593_v13  ;;  %v2976_v12 = vld [vmem:[#allocation7 + $0x48] ss:$16 sps:$4 sm:$0xff]   ;;  %v2981_v13 = vld [vmem:[#allocation7 + $0x64] ss:$16 sps:$4 sm:$0xff]  }
 0x126   :  { %1478 = vmatpush1.bf16.msra.mxu0 %v3597_v14  ;;  %1521 = vmatpush1.bf16.msra.mxu1 %v3599_v15  ;;  %v2984_v14 = vld [vmem:[#allocation7 + $0x6c] ss:$16 sps:$4 sm:$0xff]   ;;  %v2979_v15 = vld [vmem:[#allocation7 + $0x60] ss:$16 sps:$4 sm:$0xff]  }
 0x127   :  { %1479 = vmatprep.subr.bf16.mxu0 %v3603_v16  ;;  %1522 = vmatprep.subr.bf16.mxu1 %v3605_v17  ;;  %v2982_v16 = vld [vmem:[#allocation7 + $0x68] ss:$16 sps:$4 sm:$0xff]   ;;  %v2987_v17 = vld [vmem:[#allocation7 + $0x84] ss:$16 sps:$4 sm:$0xff]  }
 0x12a   :  { %1480 = vmatpush1.bf16.msra.mxu0 %v3609_v18  ;;  %1523 = vmatpush1.bf16.msra.mxu1 %v3611_v19  ;;  %v2990_v18 = vld [vmem:[#allocation7 + $0x8c] ss:$16 sps:$4 sm:$0xff]   ;;  %v2985_v19 = vld [vmem:[#allocation7 + $0x80] ss:$16 sps:$4 sm:$0xff]  }
 0x12b   :  { %1481 = vmatprep.subr.bf16.mxu0 %v3615_v20  ;;  %1524 = vmatprep.subr.bf16.mxu1 %v3617_v21  ;;  %v2993_v20 = vld [vmem:[#allocation7 + $0xa4] ss:$16 sps:$4 sm:$0xff]   ;;  %v2996_v21 = vld [vmem:[#allocation7 + $0xac] ss:$16 sps:$4 sm:$0xff]  }
 0x12e   :  { %1482 = vmatpush1.bf16.msra.mxu0 %v3621_v22  ;;  %1525 = vmatpush1.bf16.msra.mxu1 %v3623_v23  ;;  %v2991_v22 = vld [vmem:[#allocation7 + $0xa0] ss:$16 sps:$4 sm:$0xff]   ;;  %v2994_v23 = vld [vmem:[#allocation7 + $0xa8] ss:$16 sps:$4 sm:$0xff]  }
 0x12f   :  { %1483 = vmatprep.subr.bf16.mxu0 %v3627_v24  ;;  %1526 = vmatprep.subr.bf16.mxu1 %v3629_v25  ;;  %v2999_v24 = vld [vmem:[#allocation7 + $0xc4] ss:$16 sps:$4 sm:$0xff]   ;;  %v3002_v25 = vld [vmem:[#allocation7 + $0xcc] ss:$16 sps:$4 sm:$0xff]  }
 0x132   :  { %1484 = vmatpush1.bf16.msra.mxu0 %v3633_v26  ;;  %1527 = vmatpush1.bf16.msra.mxu1 %v3635_v27  ;;  %v2997_v26 = vld [vmem:[#allocation7 + $0xc0] ss:$16 sps:$4 sm:$0xff]   ;;  %v3000_v27 = vld [vmem:[#allocation7 + $0xc8] ss:$16 sps:$4 sm:$0xff]  }
 0x133   :  { %1485 = vmatprep.subr.bf16.mxu0 %v3639_v28  ;;  %1528 = vmatprep.subr.bf16.mxu1 %v3641_v29  ;;  %v3005_v28 = vld [vmem:[#allocation7 + $0xe4] ss:$16 sps:$4 sm:$0xff]   ;;  %v3008_v29 = vld [vmem:[#allocation7 + $0xec] ss:$16 sps:$4 sm:$0xff]  }
 0x136   :  { %1486 = vmatpush1.bf16.msra.mxu0 %v3645_v30  ;;  %1529 = vmatpush1.bf16.msra.mxu1 %v3647_v31  ;;  %v3003_v30 = vld [vmem:[#allocation7 + $0xe0] ss:$16 sps:$4 sm:$0xff]   ;;  %v3006_v31 = vld [vmem:[#allocation7 + $0xe8] ss:$16 sps:$4 sm:$0xff]  }
 0x137   :  { %1487 = vmatprep.subr.bf16.mxu0 %v3651_v32  ;;  %1530 = vmatprep.subr.bf16.mxu1 %v3653_v33  ;;  %v3011_v32 = vld [vmem:[#allocation7 + $0x104] ss:$16 sps:$4 sm:$0xff]   ;;  %v3014_v33 = vld [vmem:[#allocation7 + $0x10c] ss:$16 sps:$4 sm:$0xff]  }
 0x13a   :  { %1488 = vmatpush1.bf16.msra.mxu0 %v3657_v34  ;;  %1531 = vmatpush1.bf16.msra.mxu1 %v3659_v35  ;;  %v3009_v34 = vld [vmem:[#allocation7 + $0x100] ss:$16 sps:$4 sm:$0xff]   ;;  %v3012_v35 = vld [vmem:[#allocation7 + $0x108] ss:$16 sps:$4 sm:$0xff]  }
 0x13b   :  { %1489 = vmatprep.subr.bf16.mxu0 %v3663_v37  ;;  %1532 = vmatprep.subr.bf16.mxu1 %v3665_v38  ;;  %v3017_v37 = vld [vmem:[#allocation7 + $0x124] ss:$16 sps:$4 sm:$0xff]   ;;  %v3020_v38 = vld [vmem:[#allocation7 + $0x12c] ss:$16 sps:$4 sm:$0xff]  }
 0x13e   :  { %1490 = vmatpush1.bf16.msra.mxu0 %v3667_v40  ;;  %1533 = vmatpush1.bf16.msra.mxu1 %v3671_v41  ;;  %v3015_v40 = vld [vmem:[#allocation7 + $0x120] ss:$16 sps:$4 sm:$0xff]   ;;  %v3018_v41 = vld [vmem:[#allocation7 + $0x128] ss:$16 sps:$4 sm:$0xff]  }
 0x13f   :  { %1491 = vmatprep.subr.bf16.mxu0 %v3681_v46  ;;  %1534 = vmatprep.subr.bf16.mxu1 %v3683_v47  ;;  %v3021_v46 = vld [vmem:[#allocation7 + $0x140] ss:$16 sps:$4 sm:$0xff]   ;;  %v3024_v47 = vld [vmem:[#allocation7 + $0x148] ss:$16 sps:$4 sm:$0xff]  }
 0x142   :  { %1492 = vmatpush1.bf16.msra.mxu0 %v3689_v51  ;;  %1535 = vmatpush1.bf16.msra.mxu1 %v3691_v53  ;;  %v3032_v51 = vld [vmem:[#allocation7 + $0x16c] ss:$16 sps:$4 sm:$0xff]   ;;  %v1115_v53 = vld [vmem:[#allocation7 + $0x180] sm:$0xff] }
 0x143   :  { %1493 = vmatprep.subr.bf16.mxu0 %v3695_v54  ;;  %1536 = vmatprep.subr.bf16.mxu1 %v3697_v56  ;;  %v1116_v54 = vld [vmem:[#allocation7 + $0x188] sm:$0xff]  ;;  %v3027_v56 = vld [vmem:[#allocation7 + $0x160] ss:$16 sps:$4 sm:$0xff]   ;;  %v2582_v60 = vcombine.high %v1115_v53, %v1115_v53  ;;  %v2581_v62 = vcombine.low %v1115_v53, %v1115_v53 }
 0x144   :  { %v2584_v61 = vcombine.high %v1116_v54, %v1116_v54  ;;  %v3059_v53 = vld [vmem:[%s3904_s7 + $0x58] sm:$0xff]  }
 0x146   :  { %1494 = vmatpush1.bf16.msra.mxu0 %v3703_v63  ;;  %1537 = vmatpush1.bf16.msra.mxu1 %v3705_v36  ;;  %v2583_v63 = vcombine.low %v1116_v54, %v1116_v54  ;;  %v1808_v36 = vsel %vm473_vm1, %v2581_v62, 0  ;;  %v3060_v54 = vld [vmem:[%s3904_s7 + $0x18] sm:$0xff]   ;;  %v3065_v62 = vld [vmem:[%s3904_s7 + $0x70] sm:$0xff]  }
 0x147   :  { %2529 = vmatprep.subr.msk.bf16.mxu0 %vm473_vm1, %v3707_v39  ;;  %2531 = vmatprep.subr.msk.bf16.mxu1 %vm473_vm1, %v3711_v43  ;;  %v3037_v43 = vld [vmem:[%s3903_s6 + $0x40] sm:$0xff]  }
 0x148   :  { %v1814_v39 = vsel %vm473_vm1, %v2583_v63, 0  ;;  %v3066_v63 = vld [vmem:[%s3904_s7 + $0x30] sm:$0xff]  }
 0x14a   :  { %1496 = vmatpush1.bf16.msra.mxu0 %v1371_v1  ;;  %1539 = vmatpush1.bf16.msra.mxu1 %v1377_v6  ;;  %v3042_v1 = vld [vmem:[%s3903_s6 + $0x10] sm:$0xff]   ;;  %v3043_v6 = vld [vmem:[%s3903_s6 + $0x58] sm:$0xff]  }
 0x14b   :  { %1819 = vmatprep.subr.bf16.mxu0 %v2963_v55  ;;  %1862 = vmatprep.subr.bf16.mxu1 %v2966_v57  ;;  %v3044_v55 = vld [vmem:[%s3903_s6 + $0x18] sm:$0xff]   ;;  %v3045_v57 = vld [vmem:[%s3903_s6 + $0x60] sm:$0xff]  }
 0x14d   :  { %1504 = vmatmul.mubr.bf16.vlgmr.msra.gmra.mrb[0].mxu0 %v3910_v7  ;;  %1547 = vmatmul.mubr.bf16.vlgmr.msra.gmra.mrb[0].mxu1 %v3910_v7 }
 0x14e   :  { %1820 = vmatpush1.bf16.msra.mxu0 %v2961_v2  ;;  %1863 = vmatpush1.bf16.msra.mxu1 %v2964_v3  ;;  %v3046_v2 = vld [vmem:[%s3903_s6 + $0x20] sm:$0xff]   ;;  %v3047_v3 = vld [vmem:[%s3903_s6 + $0x68] sm:$0xff]  }
 0x14f   :  { %1821 = vmatprep.subr.bf16.mxu0 %v2969_v4  ;;  %1864 = vmatprep.subr.bf16.mxu1 %v2972_v5  ;;  %v3048_v4 = vld [vmem:[%s3903_s6 + $0x28] sm:$0xff]   ;;  %v3049_v5 = vld [vmem:[%s3903_s6 + $0x70] sm:$0xff]  }
 0x150   :  { %2586 = vmatprep.mubr.msk.bf16.mxu0 %vm469_vm0, %v3545_v59  ;;  %2588 = vmatprep.mubr.msk.bf16.mxu1 %vm469_vm0, %v3545_v59  ;;  %v2988_v59 = vld [vmem:[#allocation7 + $0x88] ss:$16 sps:$4 sm:$0xff]  }
 0x152   :  { %1822 = vmatpush1.bf16.msra.mxu0 %v2967_v8  ;;  %1865 = vmatpush1.bf16.msra.mxu1 %v2970_v9  ;;  %v3051_v8 = vld [vmem:[%s3903_s6 + $0x78] sm:$0xff]  }
 0x153   :  { %1823 = vmatprep.subr.bf16.mxu0 %v2975_v10  ;;  %1866 = vmatprep.subr.bf16.mxu1 %v2978_v52  ;;  %v3052_v9 = vld [vmem:[%s3903_s6 + $0x38] sm:$0xff]   ;;  %v3053_v10 = vld [vmem:[%s3904_s7 + $0x40] sm:$0xff]  }
 0x156   :  { %1824 = vmatpush1.bf16.msra.mxu0 %v2973_v11  ;;  %1867 = vmatpush1.bf16.msra.mxu1 %v2976_v12 }
 0x157   :  { %1825 = vmatprep.subr.bf16.mxu0 %v2981_v13  ;;  %1868 = vmatprep.subr.bf16.mxu1 %v2984_v14 }
 0x15a   :  { %1826 = vmatpush1.bf16.msra.mxu0 %v2979_v15  ;;  %1869 = vmatpush1.bf16.msra.mxu1 %v2982_v16 }
 0x15b   :  { %1827 = vmatprep.subr.bf16.mxu0 %v2987_v17  ;;  %1870 = vmatprep.subr.bf16.mxu1 %v2990_v18 }
 0x15e   :  { %1828 = vmatpush1.bf16.msra.mxu0 %v2985_v19  ;;  %1871 = vmatpush1.bf16.msra.mxu1 %v2988_v59 }
 0x15f   :  { %1829 = vmatprep.subr.bf16.mxu0 %v2993_v20  ;;  %1872 = vmatprep.subr.bf16.mxu1 %v2996_v21 }
 0x162   :  { %1830 = vmatpush1.bf16.msra.mxu0 %v2991_v22  ;;  %1873 = vmatpush1.bf16.msra.mxu1 %v2994_v23 }
 0x163   :  { %1831 = vmatprep.subr.bf16.mxu0 %v2999_v24  ;;  %1874 = vmatprep.subr.bf16.mxu1 %v3002_v25 }
 0x166   :  { %1832 = vmatpush1.bf16.msra.mxu0 %v2997_v26  ;;  %1875 = vmatpush1.bf16.msra.mxu1 %v3000_v27 }
 0x167   :  { %1833 = vmatprep.subr.bf16.mxu0 %v3005_v28  ;;  %1876 = vmatprep.subr.bf16.mxu1 %v3008_v29 }
 0x16a   :  { %1834 = vmatpush1.bf16.msra.mxu0 %v3003_v30  ;;  %1877 = vmatpush1.bf16.msra.mxu1 %v3006_v31 }
 0x16b   :  { %1835 = vmatprep.subr.bf16.mxu0 %v3011_v32  ;;  %1878 = vmatprep.subr.bf16.mxu1 %v3014_v33 }
 0x16e   :  { %1836 = vmatpush1.bf16.msra.mxu0 %v3009_v34  ;;  %1879 = vmatpush1.bf16.msra.mxu1 %v3012_v35 }
 0x16f   :  { %1837 = vmatprep.subr.bf16.mxu0 %v3017_v37  ;;  %1880 = vmatprep.subr.bf16.mxu1 %v3020_v38 }
 0x172   :  { %1838 = vmatpush1.bf16.msra.mxu0 %v3015_v40  ;;  %1881 = vmatpush1.bf16.msra.mxu1 %v3018_v41 }
 0x173   :  { %1839 = vmatprep.subr.bf16.mxu0 %v3023_v42  ;;  %1882 = vmatprep.subr.bf16.mxu1 %v3026_v45  ;;  %v3054_v45 = vld [vmem:[%s3904_s7] sm:$0xff]  }
 0x176   :  { %1840 = vmatpush1.bf16.msra.mxu0 %v3021_v46  ;;  %1883 = vmatpush1.bf16.msra.mxu1 %v3024_v47  ;;  %v3055_v46 = vld [vmem:[%s3904_s7 + $0x48] sm:$0xff]  }
 0x177   :  { %1841 = vmatprep.subr.bf16.mxu0 %v3029_v48  ;;  %1884 = vmatprep.subr.bf16.mxu1 %v3032_v51  ;;  %v3056_v47 = vld [vmem:[%s3904_s7 + $0x8] sm:$0xff]   ;;  %v3057_v48 = vld [vmem:[%s3904_s7 + $0x50] sm:$0xff]  }
 0x178   :  { %v3058_v51 = vld [vmem:[%s3904_s7 + $0x10] sm:$0xff]  }
 0x17a   :  { %1842 = vmatpush1.bf16.msra.mxu0 %v3027_v56  ;;  %1885 = vmatpush1.bf16.msra.mxu1 %v3030_v58  ;;  %v3061_v56 = vld [vmem:[%s3904_s7 + $0x60] sm:$0xff]  }
 0x17b   :  { %2585 = vmatprep.subr.msk.bf16.mxu0 %vm473_vm1, %v2582_v60  ;;  %2587 = vmatprep.subr.msk.bf16.mxu1 %vm473_vm1, %v2584_v61  ;;  %v3062_v58 = vld [vmem:[%s3904_s7 + $0x20] sm:$0xff]   ;;  %v3063_v60 = vld [vmem:[%s3904_s7 + $0x68] sm:$0xff]  }
 0x17c   :  { %v3064_v61 = vld [vmem:[%s3904_s7 + $0x28] sm:$0xff]  }
 0x17e   :  { %1844 = vmatpush1.bf16.msra.mxu0 %v1808_v36  ;;  %1887 = vmatpush1.bf16.msra.mxu1 %v1814_v39  ;;  %v3067_v36 = vld [vmem:[%s3904_s7 + $0x78] sm:$0xff]  }
 0x17f   :  { %2643 = vmatprep.subr.bf16.mxu1 %v3037_v43  ;;  %2621 = vmatprep.subr.bf16.mxu0 %v3037_v43  ;;  %v3068_v39 = vld [vmem:[%s3904_s7 + $0x38] sm:$0xff]  }
 0x181   :  { %1852 = vmatmul.mubr.bf16.vlgmr.msra.gmra.mrb[0].mxu0 %v3910_v7  ;;  %1895 = vmatmul.mubr.bf16.vlgmr.msra.gmra.mrb[0].mxu1 %v3910_v7  ;;  %v3050_v7 = vld [vmem:[%s3903_s6 + $0x30] sm:$0xff]  }
 0x182   :  { %2644 = vmatpush3.bf16.msra.mxu1 %v3038_v44  ;;  %2622 = vmatpush3.bf16.msra.mxu0 %v3038_v44 }
 0x183   :  { %2645 = vmatprep.subr.bf16.mxu1 %v3039_v49  ;;  %2623 = vmatprep.subr.bf16.mxu0 %v3039_v49 }
 0x186   :  { %2646 = vmatpush3.bf16.msra.mxu1 %v3040_v50  ;;  %2624 = vmatpush3.bf16.msra.mxu0 %v3040_v50 }
 0x187   :  { %2647 = vmatprep.subr.bf16.mxu1 %v3041_v0  ;;  %2625 = vmatprep.subr.bf16.mxu0 %v3041_v0 }
 0x18a   :  { %2648 = vmatpush3.bf16.msra.mxu1 %v3042_v1  ;;  %2626 = vmatpush3.bf16.msra.mxu0 %v3042_v1 }
 0x18b   :  { %2649 = vmatprep.subr.bf16.mxu1 %v3043_v6  ;;  %2627 = vmatprep.subr.bf16.mxu0 %v3043_v6 }
 0x18e   :  { %2650 = vmatpush3.bf16.msra.mxu1 %v3044_v55  ;;  %2628 = vmatpush3.bf16.msra.mxu0 %v3044_v55 }
 0x18f   :  { %2651 = vmatprep.subr.bf16.mxu1 %v3045_v57  ;;  %2629 = vmatprep.subr.bf16.mxu0 %v3045_v57 }
 0x192   :  { %2652 = vmatpush3.bf16.msra.mxu1 %v3046_v2  ;;  %2630 = vmatpush3.bf16.msra.mxu0 %v3046_v2 }
 0x193   :  { %2653 = vmatprep.subr.bf16.mxu1 %v3047_v3  ;;  %2631 = vmatprep.subr.bf16.mxu0 %v3047_v3 }
 0x196   :  { %2654 = vmatpush3.bf16.msra.mxu1 %v3048_v4  ;;  %2632 = vmatpush3.bf16.msra.mxu0 %v3048_v4 }
 0x197   :  { %2655 = vmatprep.subr.bf16.mxu1 %v3049_v5  ;;  %2633 = vmatprep.subr.bf16.mxu0 %v3049_v5 }
 0x19a   :  { %2656 = vmatpush3.bf16.msra.mxu1 %v3050_v7  ;;  %2634 = vmatpush3.bf16.msra.mxu0 %v3050_v7 }
 0x19b   :  { %2657 = vmatprep.subr.bf16.mxu1 %v3051_v8  ;;  %2635 = vmatprep.subr.bf16.mxu0 %v3051_v8 }
 0x19e   :  { %2658 = vmatpush3.bf16.msra.mxu1 %v3052_v9  ;;  %2636 = vmatpush3.bf16.msra.mxu0 %v3052_v9 }
 0x19f   :  { %2665 = vmatprep.subr.bf16.mxu0 %v3053_v10 }
 0x254   :  { %v1853_v52 = vpop.f32.mrb[0].mxu0  ;;  %v1896_v11 = vpop.f32.mrb[0].mxu1 }
 0x255   :  { %v1921_v12 = vmul.f32 %v1853_v52, %v1853_v52  ;;  %v1925_v13 = vmul.f32 %v1896_v11, %v1896_v11  ;;  %v1855_v14 = vpop.f32.mrb[1].mxu0  ;;  %v1898_v15 = vpop.f32.mrb[1].mxu1 }
 0x256   :  { %v1922_v16 = vmul.f32 %v1855_v14, %v1855_v14  ;;  %v1926_v17 = vmul.f32 %v1898_v15, %v1898_v15  ;;  %v1857_v18 = vpop.f32.mrb[2].mxu0  ;;  %v1900_v19 = vpop.f32.mrb[2].mxu1 }
 0x257   :  { %v1929_v59 = vadd.f32 %v1925_v13, %v1921_v12  ;;  %v1923_v20 = vmul.f32 %v1857_v18, %v1857_v18  ;;  %v1927_v21 = vmul.f32 %v1900_v19, %v1900_v19  ;;  %v1859_v22 = vpop.f32.mrb[3].mxu0  ;;  %v1902_v23 = vpop.f32.mrb[3].mxu1 }
 0x258   :  { %v1930_v24 = vadd.f32 %v1926_v17, %v1922_v16  ;;  %v1924_v25 = vmul.f32 %v1859_v22, %v1859_v22  ;;  %v1928_v26 = vmul.f32 %v1902_v23, %v1902_v23 }
 0x259   :  { %v1931_v27 = vadd.f32 %v1927_v21, %v1923_v20 }
 0x25a   :  { %v1932_v28 = vadd.f32 %v1928_v26, %v1924_v25 }
 0x25b   :  { %v1933_v29 = vpack.c.bf16 %v1931_v27, %v1929_v59 }
 0x25c   :  { %v1934_v30 = vpack.c.bf16 %v1932_v28, %v1930_v24 }
 0x25d   :  { %v1935_v31 = vunpack.c.l.bf16 %v1933_v29  ;;  %v1937_v32 = vunpack.c.h.bf16 %v1933_v29 }
 0x25e   :  { %v1938_v33 = vunpack.c.h.bf16 %v1934_v30  ;;  %2178 = vmatprep.mubr.bf16.mxu1 %v1934_v30  ;;  %v1936_v34 = vunpack.c.l.bf16 %v1934_v30 }
 0x25f   :  { %v1939_v35 = vsub.f32 %v1929_v59, %v1935_v31  ;;  %v1941_v37 = vsub.f32 %v1931_v27, %v1937_v32  ;;  %2179 = vmatmul.mubr.bf16.vlgmr.msra.gmra.mrb[4].mxu1 %v1933_v29 }
 0x260   :  { %v1942_v38 = vsub.f32 %v1932_v28, %v1938_v33  ;;  %v1940_v40 = vsub.f32 %v1930_v24, %v1936_v34 }
 0x261   :  { %v1943_v41 = vpack.c.bf16 %v1941_v37, %v1939_v35 }
 0x262   :  { %v1944_v42 = vpack.c.bf16 %v1942_v38, %v1940_v40 }
 0x264   :  { %2137 = vmatprep.mubr.bf16.mxu0 %v1944_v42 }
 0x265   :  { %2138 = vmatmul.mubr.bf16.vlgmr.msra.gmra.mrb[4].mxu0 %v1943_v41 }
 0x266   :  { %2666 = vmatpush3.bf16.msra.mxu0 %v3054_v45  ;;  %2315 = vmatprep.mubr.bf16.mxu0 %v1934_v30 }
 0x267   :  { %2667 = vmatprep.subr.bf16.mxu0 %v3055_v46 }
 0x26a   :  { %2668 = vmatpush3.bf16.msra.mxu0 %v3056_v47 }
 0x26b   :  { %2669 = vmatprep.subr.bf16.mxu0 %v3057_v48 }
 0x26e   :  { %2670 = vmatpush3.bf16.msra.mxu0 %v3058_v51 }
 0x26f   :  { %2671 = vmatprep.subr.bf16.mxu0 %v3059_v53 }
 0x272   :  { %2672 = vmatpush3.bf16.msra.mxu0 %v3060_v54 }
 0x273   :  { %2673 = vmatprep.subr.bf16.mxu0 %v3061_v56 }
 0x276   :  { %2674 = vmatpush3.bf16.msra.mxu0 %v3062_v58 }
 0x277   :  { %2675 = vmatprep.subr.bf16.mxu0 %v3063_v60 }
 0x27a   :  { %2676 = vmatpush3.bf16.msra.mxu0 %v3064_v61 }
 0x27b   :  { %2677 = vmatprep.subr.bf16.mxu0 %v3065_v62 }
 0x27e   :  { %2678 = vmatpush3.bf16.msra.mxu0 %v3066_v63 }
 0x27f   :  { %2679 = vmatprep.subr.bf16.mxu0 %v3067_v36 }
 0x282   :  { %2680 = vmatpush3.bf16.msra.mxu0 %v3068_v39 }
 0x285   :  { %2316 = vmatmul.mubr.bf16.vlgmr.msra.gmra.mrb[8].mxu0 %v1933_v29 }
 0x332   :  { %v2659_v43 = vpop.f32.mrb[4].mxu1 }
 0x333   :  { %v2660_v44 = vpop.f32.mrb[5].mxu1 }
 0x334   :  { %v2661_v49 = vadd.f32 %v2660_v44, %v2659_v43  ;;  %v2662_v50 = vpop.f32.mrb[6].mxu1 }
 0x335   :  { %v2663_v0 = vpop.f32.mrb[7].mxu1 }
 0x336   :  { %v2664_v1 = vadd.f32 %v2663_v0, %v2662_v50 }
 0x338   :  { %v2637_v6 = vpop.f32.mrb[4].mxu0 }
 0x339   :  { %v2638_v55 = vpop.f32.mrb[5].mxu0 }
 0x33a   :  { %v2639_v57 = vadd.f32 %v2638_v55, %v2637_v6  ;;  %v2640_v2 = vpop.f32.mrb[6].mxu0 }
 0x33b   :  { %v2641_v3 = vpop.f32.mrb[7].mxu0 }
 0x33c   :  { %v2181_v4 = vadd.f32 %v2661_v49, %v2639_v57  ;;  %v2642_v5 = vadd.f32 %v2641_v3, %v2640_v2 }
 0x33e   :  { %v2184_v7 = vadd.f32 %v2664_v1, %v2642_v5 }
 0x358   :  { %v2681_v8 = vpop.f32.mrb[8].mxu0 }
 0x359   :  { %v2682_v9 = vpop.f32.mrb[9].mxu0 }
 0x35a   :  { %v2683_v10 = vadd.f32 %v2682_v9, %v2681_v8  ;;  %v2684_v52 = vpop.f32.mrb[10].mxu0 }
 0x35b   :  { %v2685_v11 = vpop.f32.mrb[11].mxu0 }
 0x35c   :  { %v2324_v12 = vadd.f32 %v2683_v10, %v2181_v4  ;;  %v2686_v13 = vadd.f32 %v2685_v11, %v2684_v52 }
 0x35e   :  { %2326 = vst [vmem:[%s3905_s8] sm:$0xff] %v2324_v12  ;;  %v2325_v14 = vadd.f32 %v2686_v13, %v2184_v7  ;;  %v2336_v15 = vmul.f32 %v2324_v12, %v2324_v12 }
 0x360   :  { %2327 = vst [vmem:[%s3905_s8 + $0x8] sm:$0xff] %v2325_v14  ;;  %v2328_v16 = vadd.f32 %v2325_v14, %v2324_v12  ;;  %v2337_v17 = vmul.f32 %v2325_v14, %v2325_v14 }
 0x362   :  { %v2329_v18 = vrot.slane %v2328_v16, 4  ;;  %v2338_v19 = vadd.f32 %v2337_v17, %v2336_v15 }
 0x364   :  { %v2330_v59 = vadd.f32 %v2329_v18, %v2328_v16  ;;  %v2339_v20 = vrot.slane %v2338_v19, 4 }
 0x366   :  { %v2331_v21 = vrot.slane %v2330_v59, 2  ;;  %v2340_v22 = vadd.f32 %v2339_v20, %v2338_v19 }
 0x368   :  { %v2332_v23 = vadd.f32 %v2331_v21, %v2330_v59  ;;  %v2341_v24 = vrot.slane %v2340_v22, 2 }
 0x36a   :  { %v2333_v25 = vrot.slane %v2332_v23, 1  ;;  %v2342_v26 = vadd.f32 %v2341_v24, %v2340_v22 }
 0x36c   :  { %v2334_v27 = vadd.f32 %v2333_v25, %v2332_v23  ;;  %v2343_v28 = vrot.slane %v2342_v26, 1 }
 0x36e   :  { %2335 = vst [vmem:[%s3906_s9] sm:$0x1] %v2334_v27  ;;  %v2344_v29 = vadd.f32 %v2343_v28, %v2342_v26 }
 0x370   :  { %2345 = vst [vmem:[%s3906_s9 + $0x1] sm:$0x1] %v2344_v29 }
 0x371   :  { %2354 = vsyncpa [#allocation3], 1 }
 0x372   :  { %2355 = vsyncpa [#allocation5], 1 }
 0x373   :  { %2356 = vsyncpa [#allocation8], 1 }

</bundles_post_ra>
